<compile_context>
chip_gen: v5e
topology: v5e:2x2
jax: 0.10.0
libtpu: 0.0.40
codegen_flags: <defaults>
</compile_context>

<pallas_src>
import functools

import jax
import jax.numpy as jnp
from jax.experimental import pallas as pl
from jax.experimental.pallas import tpu as pltpu


def _round_up(x, m):
    return ((x + m - 1) // m) * m


# ----------------------------------------------------------------------------
# Pallas kernel: bidirectional LSTM over a time-major (T, B_tile, Dp) block.
# Emits one fused (T, B_tile, 2*Dp) output: forward hidden at lanes [:Dp],
# backward hidden at lanes [Dp:].
# ----------------------------------------------------------------------------
def _bilstm_kernel(x_ref, wih_f_ref, b_f_ref, whh_f_ref,
                   wih_b_ref, b_b_ref, whh_b_ref,
                   out_ref, gin_f_ref, gin_b_ref,
                   *, gate_dtype, time_unroll):
    T, Bt, Dp = x_ref.shape
    G = 4 * Dp
    gdt = gin_f_ref.dtype                        # gate-input scratch dtype (== matmul dtype)

    # ---- Hoisted input projection, chunked over T ---------------------------------
    # Bound the f32 matmul temporary to ~512 rows (>= MXU row count on every generation)
    # and write straight into the (bf16) gin scratches instead of materializing a full
    # (T*Bt, 4Dp) f32 slab.
    wih_f = wih_f_ref[...]
    wih_b = wih_b_ref[...]
    b_f = b_f_ref[...].astype(jnp.float32)       # (1, 4Dp) bias, hoisted once
    b_b = b_b_ref[...].astype(jnp.float32)
    tc = max(1, -(-512 // Bt))                   # ~512 rows per chunk
    tc = min(T, max(tc, -(-T // 16)))            # but at most ~16 statically unrolled chunks
    for t0 in range(0, T, tc):
        sz = min(tc, T - t0)
        x2d = x_ref[t0:t0 + sz].reshape(sz * Bt, Dp)
        gin_f_ref[t0:t0 + sz] = (
            jnp.dot(x2d, wih_f, preferred_element_type=jnp.float32) + b_f
        ).reshape(sz, Bt, G).astype(gdt)
        gin_b_ref[t0:t0 + sz] = (
            jnp.dot(x2d, wih_b, preferred_element_type=jnp.float32) + b_b
        ).reshape(sz, Bt, G).astype(gdt)

    whh_f = whh_f_ref[...]                       # (Dp, 4Dp), resident recurrent weights
    whh_b = whh_b_ref[...]
    rdt = whh_f.dtype                            # recurrent-matmul operand dtype

    def sigmoid_t(v):
        # sigmoid(x) = 0.5*tanh(0.5*x) + 0.5 : a single EUP push instead of exp + divide.
        half = jnp.asarray(0.5, v.dtype)
        return half * jnp.tanh(half * v) + half

    def gate_update(gates_f32, c):
        # gates_f32: (Bt, 4Dp) f32; gate slices are 128-lane aligned (Dp % 128 == 0).
        # Nonlinearities in gate_dtype (bf16 on v6e/v7x, f32 on v5e); cell state stays f32.
        g_ = gates_f32.astype(gate_dtype)
        i = sigmoid_t(g_[:, 0 * Dp:1 * Dp])
        f = sigmoid_t(g_[:, 1 * Dp:2 * Dp])
        g = jnp.tanh(g_[:, 2 * Dp:3 * Dp])
        o = sigmoid_t(g_[:, 3 * Dp:4 * Dp])
        c_new = (f.astype(jnp.float32) * c
                 + i.astype(jnp.float32) * g.astype(jnp.float32))
        h_new = o.astype(jnp.float32) * jnp.tanh(c_new)
        return h_new, c_new

    # ---- Interleaved fwd/bwd recurrence: only h @ whh on the serial critical path ---
    def step(t, carry):
        hf, cf, hb, cb = carry                   # h carries already in matmul dtype
        tb = T - 1 - t
        g_f = gin_f_ref[t].astype(jnp.float32) + jnp.dot(
            hf, whh_f, preferred_element_type=jnp.float32)
        g_b = gin_b_ref[tb].astype(jnp.float32) + jnp.dot(
            hb, whh_b, preferred_element_type=jnp.float32)
        hf_new, cf = gate_update(g_f, cf)
        hb_new, cb = gate_update(g_b, cb)
        out_ref[t, :, :Dp] = hf_new.astype(out_ref.dtype)    # lane-aligned dense stores
        out_ref[tb, :, Dp:] = hb_new.astype(out_ref.dtype)
        return hf_new.astype(rdt), cf, hb_new.astype(rdt), cb

    zh = jnp.zeros((Bt, Dp), rdt)
    zc = jnp.zeros((Bt, Dp), jnp.float32)
    jax.lax.fori_loop(0, T, step, (zh, zc, zh, zc), unroll=time_unroll)


# ----------------------------------------------------------------------------
# Generation-aware VMEM budgeting and batch-tile selection.
# ----------------------------------------------------------------------------
def _vmem_capacity_bytes():
    try:
        return int(pltpu.get_tpu_info().vmem_capacity_bytes)
    except Exception:                            # interpret mode / older runtimes
        return 64 * 1024 * 1024                  # conservative: v7x per-TC VMEM


def _tile_cost(b_tile, T, Dp, msz, gsz):
    """Estimated VMEM bytes for one batch tile (incl. double-buffered constant weights)."""
    G = 4 * Dp
    fixed = (2 * (4 * Dp * G * msz + 2 * G * 4)   # 4 weight tiles + 2 biases, double-buffered
             + 2 * 512 * G * 4)                   # chunked-projection f32 temporaries
    per_row = (2 * T * Dp * msz                   # x tile, double-buffered
               + 2 * T * 2 * Dp * 4               # fused f32 output tile, double-buffered
               + 2 * T * G * gsz                  # gin_f + gin_b scratches (matmul dtype)
               + 4 * G * 4                        # live per-step gate slabs
               + 16 * Dp * 4)                     # h/c carries + headroom
    return fixed + b_tile * per_row, per_row, fixed


def _pick_batch_tile(B, T, Dp, msz, gsz, budget_bytes):
    """Largest batch tile that fits the budget (MXU-row fill for the serial recurrent
    matmul); prefers >= 2 tiles so v7x's two TensorCores both get work."""
    _, per_row, fixed = _tile_cost(0, T, Dp, msz, gsz)
    avail = budget_bytes - fixed - (4 << 20)      # compiler-internal slack
    bt = max(8, avail // per_row)
    bt = int(min(bt, B))
    if bt >= B and B > 16:
        bt = -(-B // 2)                           # >= 2 tiles: megacore sharding on v7x
    return max(8, _round_up(bt, 8))


# ----------------------------------------------------------------------------
# Wrapper: batch-tiled grid, resident weights, fused lane-dense output.
# ----------------------------------------------------------------------------
def bilstm_pallas(x_tm, w, d_out, *, gate_dtype=jnp.float32, b_tile=None, time_unroll=1):
    """x_tm: (T, B, Dp) time-major, Dp % 128 == 0 -> (B, T, 2*d_out) float32."""
    T, B, Dp = x_tm.shape
    G = 4 * Dp
    msz = jnp.dtype(x_tm.dtype).itemsize          # matmul operand size (x & weights)
    gsz = msz                                     # gin scratches follow the matmul dtype

    cap = _vmem_capacity_bytes()
    soft_limit = min((cap * 5) // 8, 96 * 1024 * 1024)   # ~40 MiB on v7x, <=96 MiB on v5e/v6e
    if b_tile is None:
        b_tile = _pick_batch_tile(B, T, Dp, msz, gsz, soft_limit)
    need, _, _ = _tile_cost(b_tile, T, Dp, msz, gsz)
    vmem_limit = int(min(max(soft_limit, need + (8 << 20)), (cap * 85) // 100))

    Bpad = _round_up(B, b_tile)
    if Bpad != B:
        x_tm = jnp.pad(x_tm, ((0, 0), (0, Bpad - B), (0, 0)))

    x_spec = pl.BlockSpec((T, b_tile, Dp), lambda b: (0, b, 0))
    # Constant-index weight/bias specs stay resident across the batch grid (never refetched).
    w_spec = pl.BlockSpec((Dp, G), lambda b: (0, 0))
    bias_spec = pl.BlockSpec((1, G), lambda b: (0, 0))
    out_spec = pl.BlockSpec((T, b_tile, 2 * Dp), lambda b: (0, b, 0))

    kernel = functools.partial(_bilstm_kernel, gate_dtype=gate_dtype,
                               time_unroll=time_unroll)
    out = pl.pallas_call(
        kernel,
        out_shape=jax.ShapeDtypeStruct((T, Bpad, 2 * Dp), jnp.float32),
        grid_spec=pltpu.PrefetchScalarGridSpec(
            num_scalar_prefetch=0,
            grid=(Bpad // b_tile,),
            in_specs=[x_spec,
                      w_spec, bias_spec, w_spec,      # forward: wih, b, whh
                      w_spec, bias_spec, w_spec],     # backward: wih, b, whh
            out_specs=out_spec,
            scratch_shapes=[pltpu.VMEM((T, b_tile, G), x_tm.dtype),
                            pltpu.VMEM((T, b_tile, G), x_tm.dtype)]),
        compiler_params=pltpu.CompilerParams(
            dimension_semantics=("parallel",),
            vmem_limit_bytes=vmem_limit),
    )(x_tm, w["wih_f"], w["b_f"], w["whh_f"], w["wih_b"], w["b_b"], w["whh_b"])

    # Drop batch/lane padding; fwd || bwd is already fused along lanes (no big XLA concat).
    if d_out == Dp:
        res = out[:, :B, :]
    else:
        res = jnp.concatenate([out[:, :B, :d_out], out[:, :B, Dp:Dp + d_out]], axis=-1)
    return jnp.transpose(res, (1, 0, 2))              # (B, T, 2*d_out)


# ----------------------------------------------------------------------------
# Weight preparation: pad D -> Dp (multiple of 128), keep gates 128-lane aligned.
# For D << 128 per-gate padding inflates weights/scratch by (Dp/D)^2 — fine for the
# demo shapes; production models should use a hidden size near a multiple of 128.
# ----------------------------------------------------------------------------
def _prep_weights(params, D, Dp, matmul_dtype):
    def pad_w(wm):                                  # (D, 4D) -> (Dp, 4Dp), gate k at k*Dp
        wm = wm.reshape(D, 4, D)
        wm = jnp.pad(wm, ((0, Dp - D), (0, 0), (0, Dp - D)))
        return wm.reshape(Dp, 4 * Dp).astype(matmul_dtype)

    def pad_b(bv):                                  # (1, 4D) -> (1, 4Dp)
        bv = bv.reshape(1, 4, D)
        bv = jnp.pad(bv, ((0, 0), (0, 0), (0, Dp - D)))
        return bv.reshape(1, 4 * Dp).astype(jnp.float32)

    return dict(wih_f=pad_w(params["wih_f"]), whh_f=pad_w(params["whh_f"]),
                b_f=pad_b(params["b_f"]),
                wih_b=pad_w(params["wih_b"]), whh_b=pad_b.__class__ and pad_w(params["whh_b"]),
                b_b=pad_b(params["b_b"]))


def _bf16_gate_math_ok():
    # bf16 VPU/EUP exists on v6e/v7x but not on v5e (or older); keep gate math f32 there.
    try:
        kind = jax.devices()[0].device_kind.lower()
    except Exception:
        return False
    return not any(v in kind for v in ("v2", "v3", "v4", "v5"))


# ----------------------------------------------------------------------------
# InputEncoding forward: embedding lookup (XLA glue) + shared biLSTM kernel.
# ----------------------------------------------------------------------------
def input_encoding_forward(params, premise, hypothesis, matmul_dtype=jnp.bfloat16):
    emb = params["embedding"]                       # (vocab, D), row 0 zeros (padding_idx=0)
    D = emb.shape[1]
    Dp = _round_up(D, 128)
    emb_p = jnp.pad(emb, ((0, 0), (0, Dp - D))).astype(matmul_dtype)
    w = _prep_weights(params, D, Dp, matmul_dtype)

    bf16 = jnp.dtype(matmul_dtype) == jnp.dtype(jnp.bfloat16)
    gate_dtype = jnp.bfloat16 if (bf16 and _bf16_gate_math_ok()) else jnp.float32

    # TODO(synk): the embedding gather stays in XLA (jnp.take); an in-kernel gather via
    # PrefetchScalarGridSpec scalar prefetch + pl.Element row-gather would save one HBM
    # round trip of the activations (biggest relative win on v5e).
    px = jnp.take(emb_p, premise, axis=0)           # (B, Tp, Dp)
    hx = jnp.take(emb_p, hypothesis, axis=0)        # (B, Th, Dp)

    if px.shape[:2] == hx.shape[:2]:
        # Same length: fuse premise+hypothesis into one pallas_call (batch concat).
        # Only valid because both share T (no pad-token pollution of the backward pass).
        x = jnp.concatenate([px, hx], axis=0)                         # (2B, T, Dp)
        out = bilstm_pallas(jnp.transpose(x, (1, 0, 2)), w, D, gate_dtype=gate_dtype)
        B = premise.shape[0]
        return out[:B], out[B:]
    out1 = bilstm_pallas(jnp.transpose(px, (1, 0, 2)), w, D, gate_dtype=gate_dtype)
    out2 = bilstm_pallas(jnp.transpose(hx, (1, 0, 2)), w, D, gate_dtype=gate_dtype)
    return out1, out2


# ----------------------------------------------------------------------------
# Pure-JAX reference (numerical sanity check of the kernel).
# ----------------------------------------------------------------------------
def _lstm_dir_ref(x, wih, whh, b, reverse):
    B, T, D = x.shape

    def step(carry, x_t):
        h, c = carry
        gates = x_t @ wih + h @ whh + b
        i = jax.nn.sigmoid(gates[:, :D])
        f = jax.nn.sigmoid(gates[:, D:2 * D])
        g = jnp.tanh(gates[:, 2 * D:3 * D])
        o = jax.nn.sigmoid(gates[:, 3 * D:4 * D])
        c = f * c + i * g
        h = o * jnp.tanh(c)
        return (h, c), h

    xs = jnp.swapaxes(x, 0, 1)
    if reverse:
        xs = xs[::-1]
    _, hs = jax.lax.scan(step, (jnp.zeros((B, D)), jnp.zeros((B, D))), xs)
    if reverse:
        hs = hs[::-1]
    return jnp.swapaxes(hs, 0, 1)


def bilstm_ref(x, wih_f, whh_f, b_f, wih_b, whh_b, b_b):
    out_f = _lstm_dir_ref(x, wih_f, whh_f, b_f, reverse=False)
    out_b = _lstm_dir_ref(x, wih_b, whh_b, b_b, reverse=True)
    return jnp.concatenate([out_f, out_b], axis=-1)


# ----------------------------------------------------------------------------
# Deterministic parameter construction (shapes follow nn.Embedding / nn.LSTM).
# ----------------------------------------------------------------------------
def init_params(key, vocab_size, dim):
    ks = jax.random.split(key, 9)
    scale = 1.0 / jnp.sqrt(jnp.float32(dim))        # PyTorch LSTM init range

    emb = jax.random.normal(ks[0], (vocab_size, dim), jnp.float32)
    emb = emb.at[0].set(0.0)                        # padding_idx=0

    def u(k, shape):
        return jax.random.uniform(k, shape, jnp.float32, -scale, scale)

    # PyTorch stores weight_ih_l0 as (4D, D); we keep the transpose (D, 4D), gates [i,f,g,o].
    wih_f = u(ks[1], (dim, 4 * dim))
    whh_f = u(ks[2], (dim, 4 * dim))
    b_f = u(ks[3], (1, 4 * dim)) + u(ks[4], (1, 4 * dim))       # b_ih + b_hh
    wih_b = u(ks[5], (dim, 4 * dim))
    whh_b = u(ks[6], (dim, 4 * dim))
    b_b = u(ks[7], (1, 4 * dim)) + u(ks[8], (1, 4 * dim))

    return dict(embedding=emb, wih_f=wih_f, whh_f=whh_f, b_f=b_f,
                wih_b=wih_b, whh_b=whh_b, b_b=b_b)


if __name__ == "__main__":
    B, T, D, VOCAB = 2, 8, 32, 16

    key = jax.random.PRNGKey(0)
    k_par, k_p, k_h = jax.random.split(key, 3)
    params = init_params(k_par, VOCAB, D)

    premise = jax.random.randint(k_p, (B, T), 0, VOCAB, dtype=jnp.int32)
    hypothesis = jax.random.randint(k_h, (B, T), 0, VOCAB, dtype=jnp.int32)

    # Pure-JAX reference.
    px = jnp.take(params["embedding"], premise, axis=0)
    hx = jnp.take(params["embedding"], hypothesis, axis=0)
    lstm_args = (params["wih_f"], params["whh_f"], params["b_f"],
                 params["wih_b"], params["whh_b"], params["b_b"])
    ref1 = bilstm_ref(px, *lstm_args)
    ref2 = bilstm_ref(hx, *lstm_args)

    # f32 path: tight validation of kernel semantics.
    fwd_f32 = jax.jit(functools.partial(input_encoding_forward, params,
                                        matmul_dtype=jnp.float32))
    out1, out2 = fwd_f32(premise, hypothesis)
    jax.block_until_ready((out1, out2))
    assert out1.shape == (B, T, 2 * D) and out2.shape == (B, T, 2 * D)
    assert jnp.allclose(out1, ref1, atol=1e-3, rtol=1e-3)
    assert jnp.allclose(out2, ref2, atol=1e-3, rtol=1e-3)

    # bf16-operand path (default, MXU/EUP-friendly): looser tolerance.
    fwd_bf16 = jax.jit(functools.partial(input_encoding_forward, params,
                                         matmul_dtype=jnp.bfloat16))
    o1, o2 = fwd_bf16(premise, hypothesis)
    jax.block_until_ready((o1, o2))
    assert o1.shape == (B, T, 2 * D) and o2.shape == (B, T, 2 * D)
    assert jnp.allclose(o1, ref1, atol=5e-2, rtol=5e-2)
    assert jnp.allclose(o2, ref2, atol=5e-2, rtol=5e-2)

    print("KERNEL_OK")
</pallas_src>

<mosaic_0001>
module attributes {stable_mosaic.version = 11 : i64} {
  func.func @_bilstm_kernel(%arg0: i32, %arg1: memref<8x8x128xf32, #tpu.memory_space<vmem>>, %arg2: memref<128x512xf32, #tpu.memory_space<vmem>>, %arg3: memref<1x512xf32, #tpu.memory_space<vmem>>, %arg4: memref<128x512xf32, #tpu.memory_space<vmem>>, %arg5: memref<128x512xf32, #tpu.memory_space<vmem>>, %arg6: memref<1x512xf32, #tpu.memory_space<vmem>>, %arg7: memref<128x512xf32, #tpu.memory_space<vmem>>, %arg8: memref<8x8x256xf32, #tpu.memory_space<vmem>>, %arg9: memref<8x8x512xf32, #tpu.memory_space<vmem>>, %arg10: memref<8x8x512xf32, #tpu.memory_space<vmem>>) attributes {dimension_semantics = [#tpu.dimension_semantics<parallel>], iteration_bounds = array<i64: 1>, scalar_prefetch = 0 : i64, scratch_operands = 2 : i64, tpu.core_type = #tpu.core_type<tc>, window_params = [{transform_indices = @transform_0, window_bounds = array<i64: 8, 8, 128>}, {pipeline_mode = #tpu.pipeline_mode<synchronous>, transform_indices = @transform_1, window_bounds = array<i64: 128, 512>}, {pipeline_mode = #tpu.pipeline_mode<synchronous>, transform_indices = @transform_2, window_bounds = array<i64: 1, 512>}, {pipeline_mode = #tpu.pipeline_mode<synchronous>, transform_indices = @transform_3, window_bounds = array<i64: 128, 512>}, {pipeline_mode = #tpu.pipeline_mode<synchronous>, transform_indices = @transform_4, window_bounds = array<i64: 128, 512>}, {pipeline_mode = #tpu.pipeline_mode<synchronous>, transform_indices = @transform_5, window_bounds = array<i64: 1, 512>}, {pipeline_mode = #tpu.pipeline_mode<synchronous>, transform_indices = @transform_6, window_bounds = array<i64: 128, 512>}, {transform_indices = @transform_7, window_bounds = array<i64: 8, 8, 256>}]} {
    %c0 = arith.constant 0 : index
    %c0_0 = arith.constant 0 : index
    %0 = vector.load %arg2[%c0, %c0_0] : memref<128x512xf32, #tpu.memory_space<vmem>>, vector<128x512xf32>
    %c0_1 = arith.constant 0 : index
    %c0_2 = arith.constant 0 : index
    %1 = vector.load %arg5[%c0_1, %c0_2] : memref<128x512xf32, #tpu.memory_space<vmem>>, vector<128x512xf32>
    %c0_3 = arith.constant 0 : index
    %c0_4 = arith.constant 0 : index
    %2 = vector.load %arg3[%c0_3, %c0_4] : memref<1x512xf32, #tpu.memory_space<vmem>>, vector<1x512xf32>
    %c0_5 = arith.constant 0 : index
    %c0_6 = arith.constant 0 : index
    %3 = vector.load %arg6[%c0_5, %c0_6] : memref<1x512xf32, #tpu.memory_space<vmem>>, vector<1x512xf32>
    %c0_7 = arith.constant 0 : index
    %c0_8 = arith.constant 0 : index
    %c0_9 = arith.constant 0 : index
    %4 = vector.load %arg1[%c0_7, %c0_8, %c0_9] : memref<8x8x128xf32, #tpu.memory_space<vmem>>, vector<8x8x128xf32>
    %5 = vector.shape_cast %4 : vector<8x8x128xf32> to vector<64x128xf32>
    %cst = arith.constant dense<0.000000e+00> : vector<64x512xf32>
    %6 = tpu.matmul %5, %0, %cst {dimension_numbers = #tpu.dot_dimension_numbers<[1], [0], [0], [1], [0, 0, 1, 1], [], []>} : vector<64x128xf32>, vector<128x512xf32>, vector<64x512xf32> -> vector<64x512xf32>
    %7 = vector.broadcast %2 : vector<1x512xf32> to vector<64x512xf32>
    %8 = arith.addf %6, %7 : vector<64x512xf32>
    %9 = vector.shape_cast %8 : vector<64x512xf32> to vector<8x8x512xf32>
    %c0_10 = arith.constant 0 : index
    %c0_11 = arith.constant 0 : index
    %c0_12 = arith.constant 0 : index
    %10 = vector.load %arg9[%c0_10, %c0_11, %c0_12] : memref<8x8x512xf32, #tpu.memory_space<vmem>>, vector<8x8x512xf32>
    tpu.vector_store %arg9[%c0_10, %c0_11, %c0_12], %9 {strides = array<i32>} : memref<8x8x512xf32, #tpu.memory_space<vmem>>, vector<8x8x512xf32>,
    %cst_13 = arith.constant dense<0.000000e+00> : vector<64x512xf32>
    %11 = tpu.matmul %5, %1, %cst_13 {dimension_numbers = #tpu.dot_dimension_numbers<[1], [0], [0], [1], [0, 0, 1, 1], [], []>} : vector<64x128xf32>, vector<128x512xf32>, vector<64x512xf32> -> vector<64x512xf32>
    %12 = vector.broadcast %3 : vector<1x512xf32> to vector<64x512xf32>
    %13 = arith.addf %11, %12 : vector<64x512xf32>
    %14 = vector.shape_cast %13 : vector<64x512xf32> to vector<8x8x512xf32>
    %c0_14 = arith.constant 0 : index
    %c0_15 = arith.constant 0 : index
    %c0_16 = arith.constant 0 : index
    %15 = vector.load %arg10[%c0_14, %c0_15, %c0_16] : memref<8x8x512xf32, #tpu.memory_space<vmem>>, vector<8x8x512xf32>
    tpu.vector_store %arg10[%c0_14, %c0_15, %c0_16], %14 {strides = array<i32>} : memref<8x8x512xf32, #tpu.memory_space<vmem>>, vector<8x8x512xf32>,
    %c0_17 = arith.constant 0 : index
    %c0_18 = arith.constant 0 : index
    %16 = vector.load %arg4[%c0_17, %c0_18] : memref<128x512xf32, #tpu.memory_space<vmem>>, vector<128x512xf32>
    %c0_19 = arith.constant 0 : index
    %c0_20 = arith.constant 0 : index
    %17 = vector.load %arg7[%c0_19, %c0_20] : memref<128x512xf32, #tpu.memory_space<vmem>>, vector<128x512xf32>
    %cst_21 = arith.constant 0.000000e+00 : f32
    %18 = vector.broadcast %cst_21 : f32 to vector<8x128xf32>
    %cst_22 = arith.constant 0.000000e+00 : f32
    %19 = vector.broadcast %cst_22 : f32 to vector<8x128xf32>
    %c0_i32 = arith.constant 0 : i32
    %c8_i32 = arith.constant 8 : i32
    %20 = arith.addi %c0_i32, %c8_i32 : i32
    %c1_i32 = arith.constant 1 : i32
    %21:4 = scf.for %arg11 = %c0_i32 to %20 step %c1_i32 iter_args(%arg12 = %18, %arg13 = %19, %arg14 = %18, %arg15 = %19) -> (vector<8x128xf32>, vector<8x128xf32>, vector<8x128xf32>, vector<8x128xf32>)  : i32 {
      %c7_i32 = arith.constant 7 : i32
      %22 = arith.subi %c7_i32, %arg11 : i32
      %23 = arith.index_cast %arg11 : i32 to index
      %c0_24 = arith.constant 0 : index
      %c0_25 = arith.constant 0 : index
      %24 = vector.load %arg9[%23, %c0_24, %c0_25] : memref<8x8x512xf32, #tpu.memory_space<vmem>>, vector<1x8x512xf32>
      %25 = vector.shape_cast %24 : vector<1x8x512xf32> to vector<8x512xf32>
      %cst_26 = arith.constant dense<0.000000e+00> : vector<8x512xf32>
      %26 = tpu.matmul %arg12, %16, %cst_26 {dimension_numbers = #tpu.dot_dimension_numbers<[1], [0], [0], [1], [0, 0, 1, 1], [], []>} : vector<8x128xf32>, vector<128x512xf32>, vector<8x512xf32> -> vector<8x512xf32>
      %27 = arith.addf %25, %26 : vector<8x512xf32>
      %28 = arith.index_cast %22 : i32 to index
      %c0_27 = arith.constant 0 : index
      %c0_28 = arith.constant 0 : index
      %29 = vector.load %arg10[%28, %c0_27, %c0_28] : memref<8x8x512xf32, #tpu.memory_space<vmem>>, vector<1x8x512xf32>
      %30 = vector.shape_cast %29 : vector<1x8x512xf32> to vector<8x512xf32>
      %cst_29 = arith.constant dense<0.000000e+00> : vector<8x512xf32>
      %31 = tpu.matmul %arg14, %17, %cst_29 {dimension_numbers = #tpu.dot_dimension_numbers<[1], [0], [0], [1], [0, 0, 1, 1], [], []>} : vector<8x128xf32>, vector<128x512xf32>, vector<8x512xf32> -> vector<8x512xf32>
      %32 = arith.addf %30, %31 : vector<8x512xf32>
      %33 = vector.extract_strided_slice %27 {offsets = [0, 0], sizes = [8, 128], strides = [1, 1]} : vector<8x512xf32> to vector<8x128xf32>
      %cst_30 = arith.constant 5.000000e-01 : f32
      %34 = vector.broadcast %cst_30 : f32 to vector<8x128xf32>
      %35 = arith.mulf %34, %33 : vector<8x128xf32>
      %36 = math.tanh %35 : vector<8x128xf32>
      %cst_31 = arith.constant 5.000000e-01 : f32
      %37 = vector.broadcast %cst_31 : f32 to vector<8x128xf32>
      %38 = arith.mulf %37, %36 : vector<8x128xf32>
      %cst_32 = arith.constant 5.000000e-01 : f32
      %39 = vector.broadcast %cst_32 : f32 to vector<8x128xf32>
      %40 = arith.addf %38, %39 : vector<8x128xf32>
      %41 = vector.extract_strided_slice %27 {offsets = [0, 128], sizes = [8, 128], strides = [1, 1]} : vector<8x512xf32> to vector<8x128xf32>
      %cst_33 = arith.constant 5.000000e-01 : f32
      %42 = vector.broadcast %cst_33 : f32 to vector<8x128xf32>
      %43 = arith.mulf %42, %41 : vector<8x128xf32>
      %44 = math.tanh %43 : vector<8x128xf32>
      %cst_34 = arith.constant 5.000000e-01 : f32
      %45 = vector.broadcast %cst_34 : f32 to vector<8x128xf32>
      %46 = arith.mulf %45, %44 : vector<8x128xf32>
      %cst_35 = arith.constant 5.000000e-01 : f32
      %47 = vector.broadcast %cst_35 : f32 to vector<8x128xf32>
      %48 = arith.addf %46, %47 : vector<8x128xf32>
      %49 = vector.extract_strided_slice %27 {offsets = [0, 256], sizes = [8, 128], strides = [1, 1]} : vector<8x512xf32> to vector<8x128xf32>
      %50 = math.tanh %49 : vector<8x128xf32>
      %51 = vector.extract_strided_slice %27 {offsets = [0, 384], sizes = [8, 128], strides = [1, 1]} : vector<8x512xf32> to vector<8x128xf32>
      %cst_36 = arith.constant 5.000000e-01 : f32
      %52 = vector.broadcast %cst_36 : f32 to vector<8x128xf32>
      %53 = arith.mulf %52, %51 : vector<8x128xf32>
      %54 = math.tanh %53 : vector<8x128xf32>
      %cst_37 = arith.constant 5.000000e-01 : f32
      %55 = vector.broadcast %cst_37 : f32 to vector<8x128xf32>
      %56 = arith.mulf %55, %54 : vector<8x128xf32>
      %cst_38 = arith.constant 5.000000e-01 : f32
      %57 = vector.broadcast %cst_38 : f32 to vector<8x128xf32>
      %58 = arith.addf %56, %57 : vector<8x128xf32>
      %59 = arith.mulf %48, %arg13 : vector<8x128xf32>
      %60 = arith.mulf %40, %50 : vector<8x128xf32>
      %61 = arith.addf %59, %60 : vector<8x128xf32>
      %62 = math.tanh %61 : vector<8x128xf32>
      %63 = arith.mulf %58, %62 : vector<8x128xf32>
      %64 = vector.extract_strided_slice %32 {offsets = [0, 0], sizes = [8, 128], strides = [1, 1]} : vector<8x512xf32> to vector<8x128xf32>
      %cst_39 = arith.constant 5.000000e-01 : f32
      %65 = vector.broadcast %cst_39 : f32 to vector<8x128xf32>
      %66 = arith.mulf %65, %64 : vector<8x128xf32>
      %67 = math.tanh %66 : vector<8x128xf32>
      %cst_40 = arith.constant 5.000000e-01 : f32
      %68 = vector.broadcast %cst_40 : f32 to vector<8x128xf32>
      %69 = arith.mulf %68, %67 : vector<8x128xf32>
      %cst_41 = arith.constant 5.000000e-01 : f32
      %70 = vector.broadcast %cst_41 : f32 to vector<8x128xf32>
      %71 = arith.addf %69, %70 : vector<8x128xf32>
      %72 = vector.extract_strided_slice %32 {offsets = [0, 128], sizes = [8, 128], strides = [1, 1]} : vector<8x512xf32> to vector<8x128xf32>
      %cst_42 = arith.constant 5.000000e-01 : f32
      %73 = vector.broadcast %cst_42 : f32 to vector<8x128xf32>
      %74 = arith.mulf %73, %72 : vector<8x128xf32>
      %75 = math.tanh %74 : vector<8x128xf32>
      %cst_43 = arith.constant 5.000000e-01 : f32
      %76 = vector.broadcast %cst_43 : f32 to vector<8x128xf32>
      %77 = arith.mulf %76, %75 : vector<8x128xf32>
      %cst_44 = arith.constant 5.000000e-01 : f32
      %78 = vector.broadcast %cst_44 : f32 to vector<8x128xf32>
      %79 = arith.addf %77, %78 : vector<8x128xf32>
      %80 = vector.extract_strided_slice %32 {offsets = [0, 256], sizes = [8, 128], strides = [1, 1]} : vector<8x512xf32> to vector<8x128xf32>
      %81 = math.tanh %80 : vector<8x128xf32>
      %82 = vector.extract_strided_slice %32 {offsets = [0, 384], sizes = [8, 128], strides = [1, 1]} : vector<8x512xf32> to vector<8x128xf32>
      %cst_45 = arith.constant 5.000000e-01 : f32
      %83 = vector.broadcast %cst_45 : f32 to vector<8x128xf32>
      %84 = arith.mulf %83, %82 : vector<8x128xf32>
      %85 = math.tanh %84 : vector<8x128xf32>
      %cst_46 = arith.constant 5.000000e-01 : f32
      %86 = vector.broadcast %cst_46 : f32 to vector<8x128xf32>
      %87 = arith.mulf %86, %85 : vector<8x128xf32>
      %cst_47 = arith.constant 5.000000e-01 : f32
      %88 = vector.broadcast %cst_47 : f32 to vector<8x128xf32>
      %89 = arith.addf %87, %88 : vector<8x128xf32>
      %90 = arith.mulf %79, %arg15 : vector<8x128xf32>
      %91 = arith.mulf %71, %81 : vector<8x128xf32>
      %92 = arith.addf %90, %91 : vector<8x128xf32>
      %93 = math.tanh %92 : vector<8x128xf32>
      %94 = arith.mulf %89, %93 : vector<8x128xf32>
      %95 = arith.index_cast %arg11 : i32 to index
      %c0_48 = arith.constant 0 : index
      %c0_49 = arith.constant 0 : index
      %96 = vector.load %arg8[%95, %c0_48, %c0_49] : memref<8x8x256xf32, #tpu.memory_space<vmem>>, vector<1x8x128xf32>
      %97 = vector.shape_cast %96 : vector<1x8x128xf32> to vector<8x128xf32>
      %98 = vector.shape_cast %63 : vector<8x128xf32> to vector<1x8x128xf32>
      tpu.vector_store %arg8[%95, %c0_48, %c0_49], %98 {strides = array<i32>} : memref<8x8x256xf32, #tpu.memory_space<vmem>>, vector<1x8x128xf32>,
      %99 = arith.index_cast %22 : i32 to index
      %c0_50 = arith.constant 0 : index
      %c128 = arith.constant 128 : index
      %100 = vector.load %arg8[%99, %c0_50, %c128] : memref<8x8x256xf32, #tpu.memory_space<vmem>>, vector<1x8x128xf32>
      %101 = vector.shape_cast %100 : vector<1x8x128xf32> to vector<8x128xf32>
      %102 = vector.shape_cast %94 : vector<8x128xf32> to vector<1x8x128xf32>
      tpu.vector_store %arg8[%99, %c0_50, %c128], %102 {strides = array<i32>} : memref<8x8x256xf32, #tpu.memory_space<vmem>>, vector<1x8x128xf32>,
      scf.yield %63, %61, %94, %92 : vector<8x128xf32>, vector<8x128xf32>, vector<8x128xf32>, vector<8x128xf32>
    }
    %c8_i32_23 = arith.constant 8 : i32
    return
  }
  func.func @transform_0(%arg0: i32) -> (i32, i32, i32) {
    %c0_i32 = arith.constant 0 : i32
    %c0_i32_0 = arith.constant 0 : i32
    %c0_i32_1 = arith.constant 0 : i32
    return %c0_i32, %arg0, %c0_i32_0 : i32, i32, i32
  }
  func.func @transform_1(%arg0: i32) -> (i32, i32) {
    %c0_i32 = arith.constant 0 : i32
    %c0_i32_0 = arith.constant 0 : i32
    %c0_i32_1 = arith.constant 0 : i32
    return %c0_i32, %c0_i32_0 : i32, i32
  }
  func.func @transform_2(%arg0: i32) -> (i32, i32) {
    %c0_i32 = arith.constant 0 : i32
    %c0_i32_0 = arith.constant 0 : i32
    %c0_i32_1 = arith.constant 0 : i32
    return %c0_i32, %c0_i32_0 : i32, i32
  }
  func.func @transform_3(%arg0: i32) -> (i32, i32) {
    %c0_i32 = arith.constant 0 : i32
    %c0_i32_0 = arith.constant 0 : i32
    %c0_i32_1 = arith.constant 0 : i32
    return %c0_i32, %c0_i32_0 : i32, i32
  }
  func.func @transform_4(%arg0: i32) -> (i32, i32) {
    %c0_i32 = arith.constant 0 : i32
    %c0_i32_0 = arith.constant 0 : i32
    %c0_i32_1 = arith.constant 0 : i32
    return %c0_i32, %c0_i32_0 : i32, i32
  }
  func.func @transform_5(%arg0: i32) -> (i32, i32) {
    %c0_i32 = arith.constant 0 : i32
    %c0_i32_0 = arith.constant 0 : i32
    %c0_i32_1 = arith.constant 0 : i32
    return %c0_i32, %c0_i32_0 : i32, i32
  }
  func.func @transform_6(%arg0: i32) -> (i32, i32) {
    %c0_i32 = arith.constant 0 : i32
    %c0_i32_0 = arith.constant 0 : i32
    %c0_i32_1 = arith.constant 0 : i32
    return %c0_i32, %c0_i32_0 : i32, i32
  }
  func.func @transform_7(%arg0: i32) -> (i32, i32, i32) {
    %c0_i32 = arith.constant 0 : i32
    %c0_i32_0 = arith.constant 0 : i32
    %c0_i32_1 = arith.constant 0 : i32
    return %c0_i32, %arg0, %c0_i32_0 : i32, i32, i32
  }
}

</mosaic_0001>

<bundles_post_ra>
// kernel: input_encoding_forward.1
= control target key start
LH: loop header
LB: loop body
LE: loop exit
PB: predicated region body
PF: predicated region fallthrough
CT: control target
= control target key end

     0   :  { %12 = vsyncpa [#allocation5], 0  ;;  %s2065_s0 = inlined_call_operand.vmem [shape: f32[8,8,128], index: 0, kind: input, shape index: {}]   ;;  %s2066_s1 = inlined_call_operand.hbm [shape: f32[128,512], index: 1, kind: input, shape index: {}]   ;;  %s2067_s2 = inlined_call_operand.vmem [shape: f32[1,512], index: 2, kind: input, shape index: {}]   ;;  %s2068_s3 = inlined_call_operand.hbm [shape: f32[128,512], index: 3, kind: input, shape index: {}]   ;;  %s2069_s4 = inlined_call_operand.hbm [shape: f32[128,512], index: 4, kind: input, shape index: {}]   ;;  %s2070_s5 = inlined_call_operand.vmem [shape: f32[1,512], index: 5, kind: input, shape index: {}]   ;;  %s2071_s6 = inlined_call_operand.vmem [shape: f32[128,512], index: 6, kind: input, shape index: {}]   ;;  %s2072_s7 = inlined_call_operand.vmem [shape: f32[8,8,256], index: 7, kind: output, shape index: {}]  }
   0x1   :  { %13 = vsyncpa [#allocation7], 0  ;;  %s35_s26 = sshll.u32 %s2068_s3, 4  ;;  %s1210_s27 = smov [#allocation6]   ;;  %s36_s26 = int_to_ptr.hbm [resolvable:$true] %s35_s26 }
   0x2   :  { %s37_s28 = sshll.u32 %s1210_s27, 4  ;;  %s20_s8 = sshll.u32 %s2066_s1, 4  ;;  %s38_s28 = int_to_ptr.vmem [resolvable:$true] %s37_s28  ;;  %s21_s8 = int_to_ptr.hbm [resolvable:$true] %s20_s8 }
   0x3   :  { %s1211_s9 = smov 512   ;;  %s1212_s10 = smov 32  }
   0x4   :  { %43 = dma.hbm_to_vmem [thread:$0]  %s36_s26, 8192, %s38_s28, [#allocation7], %s1211_s9, %s1211_s9, %s1212_s10  }
   0x5   :  { %s1213_s11 = smov [#allocation4]   ;;  %s48_s15 = sshll.u32 %s2069_s4, 4  ;;  %s49_s15 = int_to_ptr.hbm [resolvable:$true] %s48_s15 }
   0x6   :  { %s22_s12 = sshll.u32 %s1213_s11, 4  ;;  %s1214_s3 = smov [#allocation8]   ;;  %s23_s12 = int_to_ptr.vmem [resolvable:$true] %s22_s12 }
   0x7   :  { %28 = dma.hbm_to_vmem [thread:$0]  %s21_s8, 8192, %s23_s12, [#allocation5], %s1211_s9, %s1211_s9, %s1212_s10  }
   0x8   :  { %s50_s16 = sshll.u32 %s1214_s3, 4  ;;  %s51_s16 = int_to_ptr.vmem [resolvable:$true] %s50_s16 }
   0x9   :  { %56 = dma.hbm_to_vmem [thread:$0]  %s49_s15, 8192, %s51_s16, [#allocation7], %s1211_s9, %s1211_s9, %s1212_s10  }
   0xa   :  { %1186 = dma.done.wait [#allocation5], 8192  }
   0xb   :  { %1187 = vsyncadd [#allocation5], 4294959104 }
   0xc   :  { %1188 = dma.done.wait [#allocation7], 16384  }
   0xd   :  { %1189 = vsyncadd [#allocation7], 4294950912  ;;  %v1264_v0 = vld [vmem:[#allocation6] sm:$0xff]  ;;  %v1266_v1 = vld [vmem:[#allocation6 + $0x8] sm:$0xff] }
   0xe   :  { %2073 = vst [vmem:[#allocation11_spill] sm:$0xff] %v1264_v0  ;;  %v1268_v2 = vld [vmem:[#allocation6 + $0x10] sm:$0xff]  ;;  %v1270_v3 = vld [vmem:[#allocation6 + $0x18] sm:$0xff]  ;;  %v1272_v4 = vld [vmem:[#allocation6 + $0x20] sm:$0xff] }
   0xf   :  { %2074 = vst [vmem:[#allocation12_spill] sm:$0xff] %v1266_v1  ;;  %v1274_v5 = vld [vmem:[#allocation6 + $0x28] sm:$0xff]  ;;  %v1276_v6 = vld [vmem:[#allocation6 + $0x30] sm:$0xff]  ;;  %v1278_v7 = vld [vmem:[#allocation6 + $0x38] sm:$0xff] }
  0x10   :  { %2075 = vst [vmem:[#allocation13_spill] sm:$0xff] %v1268_v2  ;;  %v1280_v8 = vld [vmem:[#allocation6 + $0x40] sm:$0xff]  ;;  %v1282_v9 = vld [vmem:[#allocation6 + $0x48] sm:$0xff]  ;;  %v1284_v10 = vld [vmem:[#allocation6 + $0x50] sm:$0xff] }
  0x11   :  { %2076 = vst [vmem:[#allocation14_spill] sm:$0xff] %v1270_v3  ;;  %v1286_v11 = vld [vmem:[#allocation6 + $0x58] sm:$0xff]  ;;  %v1288_v12 = vld [vmem:[#allocation6 + $0x60] sm:$0xff]  ;;  %v1290_v13 = vld [vmem:[#allocation6 + $0x68] sm:$0xff] }
  0x12   :  { %2077 = vst [vmem:[#allocation15_spill] sm:$0xff] %v1272_v4  ;;  %v1292_v14 = vld [vmem:[#allocation6 + $0x70] sm:$0xff]  ;;  %v1294_v15 = vld [vmem:[#allocation6 + $0x78] sm:$0xff]  ;;  %v1296_v16 = vld [vmem:[#allocation6 + $0x80] sm:$0xff] }
  0x13   :  { %2078 = vst [vmem:[#allocation16_spill] sm:$0xff] %v1274_v5  ;;  %v1298_v17 = vld [vmem:[#allocation6 + $0x88] sm:$0xff]  ;;  %v1300_v18 = vld [vmem:[#allocation6 + $0x90] sm:$0xff]  ;;  %v1302_v19 = vld [vmem:[#allocation6 + $0x98] sm:$0xff] }
  0x14   :  { %2079 = vst [vmem:[#allocation17_spill] sm:$0xff] %v1276_v6  ;;  %v1304_v20 = vld [vmem:[#allocation6 + $0xa0] sm:$0xff]  ;;  %v1306_v21 = vld [vmem:[#allocation6 + $0xa8] sm:$0xff]  ;;  %v1308_v22 = vld [vmem:[#allocation6 + $0xb0] sm:$0xff] }
  0x15   :  { %2080 = vst [vmem:[#allocation18_spill] sm:$0xff] %v1278_v7  ;;  %v1310_v23 = vld [vmem:[#allocation6 + $0xb8] sm:$0xff]  ;;  %v1312_v24 = vld [vmem:[#allocation6 + $0xc0] sm:$0xff]  ;;  %v1314_v25 = vld [vmem:[#allocation6 + $0xc8] sm:$0xff] }
  0x16   :  { %2081 = vst [vmem:[#allocation19_spill] sm:$0xff] %v1280_v8  ;;  %v1316_v26 = vld [vmem:[#allocation6 + $0xd0] sm:$0xff]  ;;  %v1318_v27 = vld [vmem:[#allocation6 + $0xd8] sm:$0xff]  ;;  %v1320_v28 = vld [vmem:[#allocation6 + $0xe0] sm:$0xff] }
  0x17   :  { %2082 = vst [vmem:[#allocation20_spill] sm:$0xff] %v1282_v9  ;;  %v1322_v29 = vld [vmem:[#allocation6 + $0xe8] sm:$0xff]  ;;  %v1324_v30 = vld [vmem:[#allocation6 + $0xf0] sm:$0xff]  ;;  %v1326_v31 = vld [vmem:[#allocation6 + $0xf8] sm:$0xff] }
  0x18   :  { %2083 = vst [vmem:[#allocation21_spill] sm:$0xff] %v1284_v10  ;;  %v1328_v32 = vld [vmem:[#allocation6 + $0x100] sm:$0xff]  ;;  %v1330_v33 = vld [vmem:[#allocation6 + $0x108] sm:$0xff]  ;;  %v1332_v34 = vld [vmem:[#allocation6 + $0x110] sm:$0xff] }
  0x19   :  { %2084 = vst [vmem:[#allocation22_spill] sm:$0xff] %v1286_v11  ;;  %v1334_v35 = vld [vmem:[#allocation6 + $0x118] sm:$0xff]  ;;  %v1336_v36 = vld [vmem:[#allocation6 + $0x120] sm:$0xff]  ;;  %v1338_v37 = vld [vmem:[#allocation6 + $0x128] sm:$0xff] }
  0x1a   :  { %2085 = vst [vmem:[#allocation23_spill] sm:$0xff] %v1288_v12  ;;  %v1340_v38 = vld [vmem:[#allocation6 + $0x130] sm:$0xff]  ;;  %v1342_v39 = vld [vmem:[#allocation6 + $0x138] sm:$0xff]  ;;  %v1344_v40 = vld [vmem:[#allocation6 + $0x140] sm:$0xff] }
  0x1b   :  { %2086 = vst [vmem:[#allocation24_spill] sm:$0xff] %v1290_v13  ;;  %v1346_v41 = vld [vmem:[#allocation6 + $0x148] sm:$0xff]  ;;  %v1348_v42 = vld [vmem:[#allocation6 + $0x150] sm:$0xff]  ;;  %v1350_v43 = vld [vmem:[#allocation6 + $0x158] sm:$0xff] }
  0x1c   :  { %2087 = vst [vmem:[#allocation25_spill] sm:$0xff] %v1292_v14  ;;  %v1352_v44 = vld [vmem:[#allocation6 + $0x160] sm:$0xff]  ;;  %v1354_v45 = vld [vmem:[#allocation6 + $0x168] sm:$0xff]  ;;  %v1356_v46 = vld [vmem:[#allocation6 + $0x170] sm:$0xff] }
  0x1d   :  { %2088 = vst [vmem:[#allocation26_spill] sm:$0xff] %v1294_v15  ;;  %v1358_v47 = vld [vmem:[#allocation6 + $0x178] sm:$0xff]  ;;  %v1360_v48 = vld [vmem:[#allocation6 + $0x180] sm:$0xff]  ;;  %v1362_v49 = vld [vmem:[#allocation6 + $0x188] sm:$0xff] }
  0x1e   :  { %2089 = vst [vmem:[#allocation27_spill] sm:$0xff] %v1296_v16  ;;  %v1364_v50 = vld [vmem:[#allocation6 + $0x190] sm:$0xff]  ;;  %v1366_v51 = vld [vmem:[#allocation6 + $0x198] sm:$0xff]  ;;  %v1368_v52 = vld [vmem:[#allocation6 + $0x1a0] sm:$0xff] }
  0x1f   :  { %2090 = vst [vmem:[#allocation28_spill] sm:$0xff] %v1298_v17  ;;  %v1370_v53 = vld [vmem:[#allocation6 + $0x1a8] sm:$0xff]  ;;  %v1372_v54 = vld [vmem:[#allocation6 + $0x1b0] sm:$0xff]  ;;  %v1374_v55 = vld [vmem:[#allocation6 + $0x1b8] sm:$0xff] }
  0x20   :  { %2091 = vst [vmem:[#allocation29_spill] sm:$0xff] %v1300_v18  ;;  %v1376_v56 = vld [vmem:[#allocation6 + $0x1c0] sm:$0xff]  ;;  %v1378_v57 = vld [vmem:[#allocation6 + $0x1c8] sm:$0xff]  ;;  %v1380_v58 = vld [vmem:[#allocation6 + $0x1d0] sm:$0xff] }
  0x21   :  { %2092 = vst [vmem:[#allocation30_spill] sm:$0xff] %v1302_v19  ;;  %v1382_v59 = vld [vmem:[#allocation6 + $0x1d8] sm:$0xff]  ;;  %v1384_v60 = vld [vmem:[#allocation6 + $0x1e0] sm:$0xff]  ;;  %v1386_v61 = vld [vmem:[#allocation6 + $0x1e8] sm:$0xff] }
  0x22   :  { %2093 = vst [vmem:[#allocation31_spill] sm:$0xff] %v1304_v20  ;;  %v1388_v62 = vld [vmem:[#allocation6 + $0x1f0] sm:$0xff]  ;;  %v1390_v63 = vld [vmem:[#allocation6 + $0x1f8] sm:$0xff]  ;;  %v1395_v3 = vld [vmem:[%s2071_s6] sm:$0xff] }
  0x23   :  { %2094 = vst [vmem:[#allocation32_spill] sm:$0xff] %v1306_v21  ;;  %v1400_v2 = vld [vmem:[%s2071_s6 + $0x8] sm:$0xff]  ;;  %v1405_v1 = vld [vmem:[%s2071_s6 + $0x10] sm:$0xff]  ;;  %v1410_v0 = vld [vmem:[%s2071_s6 + $0x18] sm:$0xff] }
  0x24   :  { %2095 = vst [vmem:[#allocation33_spill] sm:$0xff] %v1395_v3  ;;  %v1415_v7 = vld [vmem:[%s2071_s6 + $0x20] sm:$0xff]  ;;  %v1420_v3 = vld [vmem:[%s2071_s6 + $0x28] sm:$0xff]  ;;  %v136_v6 = vld [vmem:[#allocation4 + $0x1f8] sm:$0xff] }
  0x25   :  { %2096 = vst [vmem:[#allocation34_spill] sm:$0xff] %v1400_v2  ;;  %v1425_v2 = vld [vmem:[%s2071_s6 + $0x30] sm:$0xff]  ;;  %343 = vmatpush.msra.mxu3 %v136_v6  ;;  %v133_v11 = vld [vmem:[#allocation4 + $0x1e0] sm:$0xff]  ;;  %v134_v10 = vld [vmem:[#allocation4 + $0x1e8] sm:$0xff] }
  0x26   :  { %2097 = vst [vmem:[#allocation35_spill] sm:$0xff] %v1405_v1  ;;  %v1430_v1 = vld [vmem:[%s2071_s6 + $0x38] sm:$0xff]  ;;  %v131_v5 = vld [vmem:[#allocation4 + $0x1d0] sm:$0xff]  ;;  %220 = vmatpush.msra.mxu0 %v133_v11  ;;  %261 = vmatpush.msra.mxu1 %v134_v10  ;;  %v129_v9 = vld [vmem:[#allocation4 + $0x1c0] sm:$0xff] }
  0x27   :  { %2098 = vst [vmem:[#allocation36_spill] sm:$0xff] %v1410_v0  ;;  %v1435_v0 = vld [vmem:[%s2071_s6 + $0x40] sm:$0xff]  ;;  %v127_v4 = vld [vmem:[#allocation4 + $0x1b0] sm:$0xff]  ;;  %v130_v8 = vld [vmem:[#allocation4 + $0x1c8] sm:$0xff] }
  0x28   :  { %2099 = vst [vmem:[#allocation37_spill] sm:$0xff] %v1415_v7  ;;  %v1440_v7 = vld [vmem:[%s2071_s6 + $0x48] sm:$0xff]  ;;  %v124_v15 = vld [vmem:[#allocation4 + $0x198] sm:$0xff]  ;;  %221 = vmatpush.msra.mxu0 %v129_v9  ;;  %262 = vmatpush.msra.mxu1 %v130_v8  ;;  %v119_v14 = vld [vmem:[#allocation4 + $0x170] sm:$0xff] }
  0x29   :  { %2100 = vst [vmem:[#allocation38_spill] sm:$0xff] %v1420_v3  ;;  %v1445_v3 = vld [vmem:[%s2071_s6 + $0x50] sm:$0xff]  ;;  %v121_v6 = vld [vmem:[#allocation4 + $0x180] sm:$0xff]  ;;  %v120_v13 = vld [vmem:[#allocation4 + $0x178] sm:$0xff] }
  0x2a   :  { %2101 = vst [vmem:[#allocation39_spill] sm:$0xff] %v1425_v2  ;;  %v1450_v2 = vld [vmem:[%s2071_s6 + $0x58] sm:$0xff]  ;;  %v117_v10 = vld [vmem:[#allocation4 + $0x160] sm:$0xff]  ;;  %v111_v9 = vld [vmem:[#allocation4 + $0x130] sm:$0xff] }
  0x2b   :  { %2102 = vst [vmem:[#allocation40_spill] sm:$0xff] %v1430_v1  ;;  %v1455_v1 = vld [vmem:[%s2071_s6 + $0x60] sm:$0xff]  ;;  %v116_v11 = vld [vmem:[#allocation4 + $0x158] sm:$0xff]  ;;  %v114_v8 = vld [vmem:[#allocation4 + $0x148] sm:$0xff] }
  0x2c   :  { %2103 = vst [vmem:[#allocation41_spill] sm:$0xff] %v1435_v0  ;;  %v1460_v0 = vld [vmem:[%s2071_s6 + $0x68] sm:$0xff]  ;;  %v113_v12 = vld [vmem:[#allocation4 + $0x140] sm:$0xff]  ;;  %v148_v19 = vld [vmem:[#allocation8 + $0x58] sm:$0xff] }
  0x2d   :  { %2104 = vst [vmem:[#allocation42_spill] sm:$0xff] %v1440_v7  ;;  %v1465_v7 = vld [vmem:[%s2071_s6 + $0x70] sm:$0xff]  ;;  %v138_v18 = vld [vmem:[#allocation8 + $0x8] sm:$0xff] }
  0x2e   :  { %2105 = vst [vmem:[#allocation43_spill] sm:$0xff] %v1445_v3  ;;  %v1470_v3 = vld [vmem:[%s2071_s6 + $0x78] sm:$0xff] }
  0x2f   :  { %2106 = vst [vmem:[#allocation44_spill] sm:$0xff] %v1450_v2  ;;  %v1475_v2 = vld [vmem:[%s2071_s6 + $0x80] sm:$0xff] }
  0x30   :  { %2107 = vst [vmem:[#allocation45_spill] sm:$0xff] %v1455_v1  ;;  %v1480_v1 = vld [vmem:[%s2071_s6 + $0x88] sm:$0xff] }
  0x31   :  { %2108 = vst [vmem:[#allocation46_spill] sm:$0xff] %v1460_v0  ;;  %v1485_v0 = vld [vmem:[%s2071_s6 + $0x90] sm:$0xff] }
  0x32   :  { %2109 = vst [vmem:[#allocation47_spill] sm:$0xff] %v1465_v7  ;;  %v1490_v7 = vld [vmem:[%s2071_s6 + $0x98] sm:$0xff] }
  0x33   :  { %2110 = vst [vmem:[#allocation48_spill] sm:$0xff] %v1470_v3  ;;  %v1495_v3 = vld [vmem:[%s2071_s6 + $0xa0] sm:$0xff] }
  0x34   :  { %2111 = vst [vmem:[#allocation49_spill] sm:$0xff] %v1475_v2  ;;  %v1500_v2 = vld [vmem:[%s2071_s6 + $0xa8] sm:$0xff] }
  0x35   :  { %2112 = vst [vmem:[#allocation50_spill] sm:$0xff] %v1480_v1  ;;  %v1505_v1 = vld [vmem:[%s2071_s6 + $0xb0] sm:$0xff] }
  0x36   :  { %2113 = vst [vmem:[#allocation51_spill] sm:$0xff] %v1485_v0  ;;  %v1510_v0 = vld [vmem:[%s2071_s6 + $0xb8] sm:$0xff] }
  0x37   :  { %2114 = vst [vmem:[#allocation52_spill] sm:$0xff] %v1490_v7  ;;  %v1515_v7 = vld [vmem:[%s2071_s6 + $0xc0] sm:$0xff] }
  0x38   :  { %2115 = vst [vmem:[#allocation53_spill] sm:$0xff] %v1495_v3  ;;  %v1520_v3 = vld [vmem:[%s2071_s6 + $0xc8] sm:$0xff] }
  0x39   :  { %2116 = vst [vmem:[#allocation54_spill] sm:$0xff] %v1500_v2  ;;  %v1525_v2 = vld [vmem:[%s2071_s6 + $0xd0] sm:$0xff] }
  0x3a   :  { %2117 = vst [vmem:[#allocation55_spill] sm:$0xff] %v1505_v1  ;;  %v1530_v1 = vld [vmem:[%s2071_s6 + $0xd8] sm:$0xff] }
  0x3b   :  { %2118 = vst [vmem:[#allocation56_spill] sm:$0xff] %v1510_v0  ;;  %v1535_v0 = vld [vmem:[%s2071_s6 + $0xe0] sm:$0xff] }
  0x3c   :  { %2119 = vst [vmem:[#allocation57_spill] sm:$0xff] %v1515_v7  ;;  %v1540_v7 = vld [vmem:[%s2071_s6 + $0xe8] sm:$0xff] }
  0x3d   :  { %2120 = vst [vmem:[#allocation58_spill] sm:$0xff] %v1520_v3  ;;  %v1545_v3 = vld [vmem:[%s2071_s6 + $0xf0] sm:$0xff] }
  0x3e   :  { %2121 = vst [vmem:[#allocation59_spill] sm:$0xff] %v1525_v2  ;;  %v1550_v2 = vld [vmem:[%s2071_s6 + $0xf8] sm:$0xff] }
  0x3f   :  { %2122 = vst [vmem:[#allocation60_spill] sm:$0xff] %v1530_v1  ;;  %v1555_v1 = vld [vmem:[%s2071_s6 + $0x100] sm:$0xff] }
  0x40   :  { %2123 = vst [vmem:[#allocation61_spill] sm:$0xff] %v1535_v0  ;;  %v1560_v0 = vld [vmem:[%s2071_s6 + $0x108] sm:$0xff] }
  0x41   :  { %2124 = vst [vmem:[#allocation62_spill] sm:$0xff] %v1540_v7  ;;  %v1565_v7 = vld [vmem:[%s2071_s6 + $0x110] sm:$0xff] }
  0x42   :  { %2125 = vst [vmem:[#allocation63_spill] sm:$0xff] %v1545_v3  ;;  %v1570_v3 = vld [vmem:[%s2071_s6 + $0x118] sm:$0xff] }
  0x43   :  { %2126 = vst [vmem:[#allocation64_spill] sm:$0xff] %v1550_v2  ;;  %v1575_v2 = vld [vmem:[%s2071_s6 + $0x120] sm:$0xff] }
  0x44   :  { %2127 = vst [vmem:[#allocation65_spill] sm:$0xff] %v1555_v1  ;;  %v1580_v1 = vld [vmem:[%s2071_s6 + $0x128] sm:$0xff] }
  0x45   :  { %2128 = vst [vmem:[#allocation66_spill] sm:$0xff] %v1560_v0  ;;  %v1585_v0 = vld [vmem:[%s2071_s6 + $0x130] sm:$0xff] }
  0x46   :  { %2129 = vst [vmem:[#allocation67_spill] sm:$0xff] %v1565_v7  ;;  %v1590_v7 = vld [vmem:[%s2071_s6 + $0x138] sm:$0xff] }
  0x47   :  { %2130 = vst [vmem:[#allocation68_spill] sm:$0xff] %v1570_v3  ;;  %v1595_v3 = vld [vmem:[%s2071_s6 + $0x140] sm:$0xff] }
  0x48   :  { %2131 = vst [vmem:[#allocation69_spill] sm:$0xff] %v1575_v2  ;;  %v1600_v2 = vld [vmem:[%s2071_s6 + $0x148] sm:$0xff] }
  0x49   :  { %2132 = vst [vmem:[#allocation70_spill] sm:$0xff] %v1580_v1  ;;  %v1605_v1 = vld [vmem:[%s2071_s6 + $0x150] sm:$0xff] }
  0x4a   :  { %2133 = vst [vmem:[#allocation71_spill] sm:$0xff] %v1585_v0  ;;  %v1610_v0 = vld [vmem:[%s2071_s6 + $0x158] sm:$0xff] }
  0x4b   :  { %2134 = vst [vmem:[#allocation72_spill] sm:$0xff] %v1590_v7  ;;  %v1615_v7 = vld [vmem:[%s2071_s6 + $0x160] sm:$0xff] }
  0x4c   :  { %2135 = vst [vmem:[#allocation73_spill] sm:$0xff] %v1595_v3  ;;  %v1620_v3 = vld [vmem:[%s2071_s6 + $0x168] sm:$0xff] }
  0x4d   :  { %2136 = vst [vmem:[#allocation74_spill] sm:$0xff] %v1600_v2  ;;  %v1625_v2 = vld [vmem:[%s2071_s6 + $0x170] sm:$0xff] }
  0x4e   :  { %2137 = vst [vmem:[#allocation75_spill] sm:$0xff] %v1605_v1  ;;  %v1630_v1 = vld [vmem:[%s2071_s6 + $0x178] sm:$0xff] }
  0x4f   :  { %2138 = vst [vmem:[#allocation76_spill] sm:$0xff] %v1610_v0  ;;  %v1635_v0 = vld [vmem:[%s2071_s6 + $0x180] sm:$0xff] }
  0x50   :  { %2139 = vst [vmem:[#allocation77_spill] sm:$0xff] %v1615_v7  ;;  %v1640_v7 = vld [vmem:[%s2071_s6 + $0x188] sm:$0xff] }
  0x51   :  { %2140 = vst [vmem:[#allocation78_spill] sm:$0xff] %v1620_v3  ;;  %v1645_v3 = vld [vmem:[%s2071_s6 + $0x190] sm:$0xff] }
  0x52   :  { %2141 = vst [vmem:[#allocation79_spill] sm:$0xff] %v1625_v2  ;;  %v1650_v2 = vld [vmem:[%s2071_s6 + $0x198] sm:$0xff] }
  0x53   :  { %2142 = vst [vmem:[#allocation80_spill] sm:$0xff] %v1630_v1  ;;  %v1655_v1 = vld [vmem:[%s2071_s6 + $0x1a0] sm:$0xff] }
  0x54   :  { %2143 = vst [vmem:[#allocation81_spill] sm:$0xff] %v1635_v0  ;;  %v1660_v0 = vld [vmem:[%s2071_s6 + $0x1a8] sm:$0xff] }
  0x55   :  { %2144 = vst [vmem:[#allocation82_spill] sm:$0xff] %v1640_v7  ;;  %v1665_v7 = vld [vmem:[%s2071_s6 + $0x1b0] sm:$0xff] }
  0x56   :  { %2145 = vst [vmem:[#allocation83_spill] sm:$0xff] %v1645_v3  ;;  %v1670_v3 = vld [vmem:[%s2071_s6 + $0x1b8] sm:$0xff] }
  0x57   :  { %2146 = vst [vmem:[#allocation84_spill] sm:$0xff] %v1650_v2  ;;  %v1675_v2 = vld [vmem:[%s2071_s6 + $0x1c0] sm:$0xff] }
  0x58   :  { %2147 = vst [vmem:[#allocation85_spill] sm:$0xff] %v1655_v1  ;;  %v1680_v1 = vld [vmem:[%s2071_s6 + $0x1c8] sm:$0xff] }
  0x59   :  { %2148 = vst [vmem:[#allocation86_spill] sm:$0xff] %v1660_v0  ;;  %v1685_v0 = vld [vmem:[%s2071_s6 + $0x1d0] sm:$0xff] }
  0x5a   :  { %2149 = vst [vmem:[#allocation87_spill] sm:$0xff] %v1665_v7  ;;  %v1690_v7 = vld [vmem:[%s2071_s6 + $0x1d8] sm:$0xff] }
  0x5b   :  { %2150 = vst [vmem:[#allocation88_spill] sm:$0xff] %v1670_v3  ;;  %v1695_v3 = vld [vmem:[%s2071_s6 + $0x1e0] sm:$0xff] }
  0x5c   :  { %2151 = vst [vmem:[#allocation89_spill] sm:$0xff] %v1675_v2  ;;  %v1700_v2 = vld [vmem:[%s2071_s6 + $0x1e8] sm:$0xff] }
  0x5d   :  { %2152 = vst [vmem:[#allocation90_spill] sm:$0xff] %v1680_v1  ;;  %v1705_v1 = vld [vmem:[%s2071_s6 + $0x1f0] sm:$0xff] }
  0x5e   :  { %2153 = vst [vmem:[#allocation91_spill] sm:$0xff] %v1685_v0  ;;  %v1710_v0 = vld [vmem:[%s2071_s6 + $0x1f8] sm:$0xff] }
  0x5f   :  { %2154 = vst [vmem:[#allocation92_spill] sm:$0xff] %v1690_v7  ;;  %v135_v7 = vld [vmem:[#allocation4 + $0x1f0] sm:$0xff] }
  0x60   :  { %2155 = vst [vmem:[#allocation93_spill] sm:$0xff] %v1695_v3  ;;  %302 = vmatpush.msra.mxu2 %v135_v7  ;;  %v132_v3 = vld [vmem:[#allocation4 + $0x1d8] sm:$0xff]  ;;  %v126_v7 = vld [vmem:[#allocation4 + $0x1a8] sm:$0xff] }
  0x61   :  { %2156 = vst [vmem:[#allocation94_spill] sm:$0xff] %v1700_v2  ;;  %v128_v2 = vld [vmem:[#allocation4 + $0x1b8] sm:$0xff]  ;;  %344 = vmatpush.msra.mxu3 %v132_v3  ;;  %263 = vmatpush.msra.mxu1 %v126_v7  ;;  %v115_v3 = vld [vmem:[#allocation4 + $0x150] sm:$0xff]  ;;  %v110_v7 = vld [vmem:[#allocation4 + $0x128] sm:$0xff] }
  0x62   :  { %2157 = vst [vmem:[#allocation95_spill] sm:$0xff] %v1705_v1  ;;  %303 = vmatpush.msra.mxu2 %v131_v5  ;;  %v123_v1 = vld [vmem:[#allocation4 + $0x190] sm:$0xff]  ;;  %v122_v5 = vld [vmem:[#allocation4 + $0x188] sm:$0xff] }
  0x63   :  { %2158 = vst [vmem:[#allocation96_spill] sm:$0xff] %v1710_v0  ;;  %v125_v0 = vld [vmem:[#allocation4 + $0x1a0] sm:$0xff]  ;;  %345 = vmatpush.msra.mxu3 %v128_v2  ;;  %264 = vmatpush.msra.mxu1 %v122_v5  ;;  %v112_v2 = vld [vmem:[#allocation4 + $0x138] sm:$0xff]  ;;  %v106_v5 = vld [vmem:[#allocation4 + $0x108] sm:$0xff] }
  0x64   :  { %304 = vmatpush.msra.mxu2 %v127_v4  ;;  %222 = vmatpush.msra.mxu0 %v125_v0  ;;  %v118_v4 = vld [vmem:[#allocation4 + $0x168] sm:$0xff]  ;;  %v107_v0 = vld [vmem:[#allocation4 + $0x110] sm:$0xff] }
  0x65   :  { %346 = vmatpush.msra.mxu3 %v124_v15  ;;  %265 = vmatpush.msra.mxu1 %v118_v4  ;;  %v108_v15 = vld [vmem:[#allocation4 + $0x118] sm:$0xff]  ;;  %v102_v4 = vld [vmem:[#allocation4 + $0xe8] sm:$0xff] }
  0x66   :  { %305 = vmatpush.msra.mxu2 %v123_v1  ;;  %223 = vmatpush.msra.mxu0 %v121_v6  ;;  %v109_v1 = vld [vmem:[#allocation4 + $0x120] sm:$0xff] }
  0x67   :  { %347 = vmatpush.msra.mxu3 %v120_v13  ;;  %266 = vmatpush.msra.mxu1 %v114_v8  ;;  %v105_v6 = vld [vmem:[#allocation4 + $0x100] sm:$0xff]  ;;  %v104_v13 = vld [vmem:[#allocation4 + $0xf8] sm:$0xff]  ;;  %v98_v8 = vld [vmem:[#allocation4 + $0xc8] sm:$0xff] }
  0x68   :  { %306 = vmatpush.msra.mxu2 %v119_v14  ;;  %224 = vmatpush.msra.mxu0 %v117_v10  ;;  %v103_v14 = vld [vmem:[#allocation4 + $0xf0] sm:$0xff]  ;;  %v101_v10 = vld [vmem:[#allocation4 + $0xe0] sm:$0xff] }
  0x69   :  { %348 = vmatpush.msra.mxu3 %v116_v11  ;;  %267 = vmatpush.msra.mxu1 %v110_v7  ;;  %v100_v11 = vld [vmem:[#allocation4 + $0xd8] sm:$0xff]  ;;  %v94_v7 = vld [vmem:[#allocation4 + $0xa8] sm:$0xff] }
  0x6a   :  { %307 = vmatpush.msra.mxu2 %v115_v3  ;;  %225 = vmatpush.msra.mxu0 %v113_v12  ;;  %v99_v3 = vld [vmem:[#allocation4 + $0xd0] sm:$0xff] }
  0x6b   :  { %349 = vmatpush.msra.mxu3 %v112_v2  ;;  %268 = vmatpush.msra.mxu1 %v106_v5  ;;  %v95_v12 = vld [vmem:[#allocation4 + $0xb0] sm:$0xff]  ;;  %v96_v2 = vld [vmem:[#allocation4 + $0xb8] sm:$0xff]  ;;  %v90_v5 = vld [vmem:[#allocation4 + $0x88] sm:$0xff] }
  0x6c   :  { %308 = vmatpush.msra.mxu2 %v111_v9  ;;  %226 = vmatpush.msra.mxu0 %v109_v1  ;;  %v97_v9 = vld [vmem:[#allocation4 + $0xc0] sm:$0xff] }
  0x6d   :  { %350 = vmatpush.msra.mxu3 %v108_v15  ;;  %269 = vmatpush.msra.mxu1 %v102_v4  ;;  %v93_v1 = vld [vmem:[#allocation4 + $0xa0] sm:$0xff]  ;;  %v92_v15 = vld [vmem:[#allocation4 + $0x98] sm:$0xff]  ;;  %v86_v4 = vld [vmem:[#allocation4 + $0x68] sm:$0xff] }
  0x6e   :  { %309 = vmatpush.msra.mxu2 %v107_v0  ;;  %227 = vmatpush.msra.mxu0 %v105_v6  ;;  %v91_v0 = vld [vmem:[#allocation4 + $0x90] sm:$0xff]  ;;  %v89_v6 = vld [vmem:[#allocation4 + $0x80] sm:$0xff] }
  0x6f   :  { %351 = vmatpush.msra.mxu3 %v104_v13  ;;  %270 = vmatpush.msra.mxu1 %v98_v8  ;;  %v88_v13 = vld [vmem:[#allocation4 + $0x78] sm:$0xff]  ;;  %v82_v8 = vld [vmem:[#allocation4 + $0x48] sm:$0xff] }
  0x70   :  { %310 = vmatpush.msra.mxu2 %v103_v14  ;;  %228 = vmatpush.msra.mxu0 %v101_v10  ;;  %v87_v14 = vld [vmem:[#allocation4 + $0x70] sm:$0xff]  ;;  %v85_v10 = vld [vmem:[#allocation4 + $0x60] sm:$0xff] }
  0x71   :  { %352 = vmatpush.msra.mxu3 %v100_v11  ;;  %271 = vmatpush.msra.mxu1 %v94_v7  ;;  %v84_v11 = vld [vmem:[#allocation4 + $0x58] sm:$0xff]  ;;  %v1715_v7 = vld [vmem:[%s2065_s0] sm:$0xff] }
  0x72   :  { %311 = vmatpush.msra.mxu2 %v99_v3  ;;  %229 = vmatpush.msra.mxu0 %v97_v9  ;;  %v83_v3 = vld [vmem:[#allocation4 + $0x50] sm:$0xff]  ;;  %v81_v9 = vld [vmem:[#allocation4 + $0x40] sm:$0xff] }
  0x73   :  { %353 = vmatpush.msra.mxu3 %v96_v2  ;;  %272 = vmatpush.msra.mxu1 %v90_v5  ;;  %v80_v2 = vld [vmem:[#allocation4 + $0x38] sm:$0xff]  ;;  %v195_v5 = vld [vmem:[#allocation8 + $0x1d0] sm:$0xff] }
  0x74   :  { %312 = vmatpush.msra.mxu2 %v95_v12  ;;  %230 = vmatpush.msra.mxu0 %v93_v1  ;;  %v79_v12 = vld [vmem:[#allocation4 + $0x30] sm:$0xff]  ;;  %v77_v1 = vld [vmem:[#allocation4 + $0x20] sm:$0xff] }
  0x75   :  { %354 = vmatpush.msra.mxu3 %v92_v15  ;;  %273 = vmatpush.msra.mxu1 %v86_v4  ;;  %v76_v15 = vld [vmem:[#allocation4 + $0x18] sm:$0xff]  ;;  %v197_v4 = vld [vmem:[#allocation8 + $0x1e0] sm:$0xff] }
  0x76   :  { %313 = vmatpush.msra.mxu2 %v91_v0  ;;  %231 = vmatpush.msra.mxu0 %v89_v6  ;;  %v75_v0 = vld [vmem:[#allocation4 + $0x10] sm:$0xff]  ;;  %v200_v6 = vld [vmem:[#allocation8 + $0x1f8] sm:$0xff] }
  0x77   :  { %355 = vmatpush.msra.mxu3 %v88_v13  ;;  %274 = vmatpush.msra.mxu1 %v82_v8  ;;  %v78_v13 = vld [vmem:[#allocation4 + $0x28] sm:$0xff] }
  0x78   :  { %314 = vmatpush.msra.mxu2 %v87_v14  ;;  %232 = vmatpush.msra.mxu0 %v85_v10  ;;  %v199_v14 = vld [vmem:[#allocation8 + $0x1f0] sm:$0xff]  ;;  %v196_v10 = vld [vmem:[#allocation8 + $0x1d8] sm:$0xff]  ;;  %v1724_v8 = vld [vmem:[%s2065_s0 + $0x8] sm:$0xff] }
  0x79   :  { %356 = vmatpush.msra.mxu3 %v84_v11  ;;  %v74_v11 = vld [vmem:[#allocation4 + $0x8] sm:$0xff]  ;;  %275 = vmatpush.msra.mxu1 %v78_v13 }
  0x7a   :  { %315 = vmatpush.msra.mxu2 %v83_v3  ;;  %233 = vmatpush.msra.mxu0 %v81_v9  ;;  %v73_v3 = vld [vmem:[#allocation4] sm:$0xff]  ;;  %v191_v9 = vld [vmem:[#allocation8 + $0x1b0] sm:$0xff]  ;;  %v190_v13 = vld [vmem:[#allocation8 + $0x1a8] sm:$0xff] }
  0x7b   :  { %357 = vmatpush.msra.mxu3 %v80_v2  ;;  %276 = vmatpush.msra.mxu1 %v74_v11  ;;  %v192_v2 = vld [vmem:[#allocation8 + $0x1b8] sm:$0xff]  ;;  %v186_v11 = vld [vmem:[#allocation8 + $0x188] sm:$0xff] }
  0x7c   :  { %316 = vmatpush.msra.mxu2 %v79_v12  ;;  %234 = vmatpush.msra.mxu0 %v77_v1  ;;  %v198_v12 = vld [vmem:[#allocation8 + $0x1e8] sm:$0xff] }
  0x7d   :  { %358 = vmatpush.msra.mxu3 %v76_v15  ;;  %277 = vmatmul.f32.vlgmr.msra.gmra.mxu1 %v1715_v7  ;;  %v194_v1 = vld [vmem:[#allocation8 + $0x1c8] sm:$0xff]  ;;  %v187_v15 = vld [vmem:[#allocation8 + $0x190] sm:$0xff] }
  0x7e   :  { %317 = vmatpush.msra.mxu2 %v75_v0  ;;  %359 = vmatmul.f32.vlgmr.msra.gmra.mxu3 %v1715_v7  ;;  %v193_v0 = vld [vmem:[#allocation8 + $0x1c0] sm:$0xff] }
  0x7f   :  { %318 = vmatmul.f32.vlgmr.msra.gmra.mxu2 %v1715_v7  ;;  %548 = vmatpush.msrb.mxu3 %v200_v6  ;;  %v189_v6 = vld [vmem:[#allocation8 + $0x1a0] sm:$0xff] }
  0x80   :  { %507 = vmatpush.msrb.mxu2 %v199_v14  ;;  %235 = vmatpush.msra.mxu0 %v73_v3  ;;  %v188_v14 = vld [vmem:[#allocation8 + $0x198] sm:$0xff] }
  0x81   :  { %549 = vmatpush.msrb.mxu3 %v196_v10  ;;  %236 = vmatmul.f32.vlgmr.msra.gmra.mxu0 %v1715_v7  ;;  %v184_v3 = vld [vmem:[#allocation8 + $0x178] sm:$0xff]  ;;  %v185_v10 = vld [vmem:[#allocation8 + $0x180] sm:$0xff] }
  0x82   :  { %508 = vmatpush.msrb.mxu2 %v195_v5  ;;  %425 = vmatpush.msrb.mxu0 %v197_v4  ;;  %v183_v5 = vld [vmem:[#allocation8 + $0x170] sm:$0xff] }
  0x83   :  { %466 = vmatpush.msrb.mxu1 %v198_v12  ;;  %550 = vmatpush.msrb.mxu3 %v192_v2  ;;  %v179_v4 = vld [vmem:[#allocation8 + $0x150] sm:$0xff]  ;;  %v180_v12 = vld [vmem:[#allocation8 + $0x158] sm:$0xff]  ;;  %v181_v2 = vld [vmem:[#allocation8 + $0x160] sm:$0xff] }
  0x84   :  { %509 = vmatpush.msrb.mxu2 %v191_v9  ;;  %426 = vmatpush.msrb.mxu0 %v193_v0  ;;  %v1733_v9 = vld [vmem:[%s2065_s0 + $0x10] sm:$0xff]  ;;  %v182_v0 = vld [vmem:[#allocation8 + $0x168] sm:$0xff] }
  0x85   :  { %467 = vmatpush.msrb.mxu1 %v194_v1  ;;  %551 = vmatpush.msrb.mxu3 %v188_v14  ;;  %v175_v1 = vld [vmem:[#allocation8 + $0x130] sm:$0xff]  ;;  %v177_v14 = vld [vmem:[#allocation8 + $0x140] sm:$0xff] }
  0x86   :  { %362 = vmatmul.f32.gmra.mxu3 %v1724_v8  ;;  %510 = vmatpush.msrb.mxu2 %v187_v15  ;;  %v176_v15 = vld [vmem:[#allocation8 + $0x138] sm:$0xff] }
  0x87   :  { %321 = vmatmul.f32.gmra.mxu2 %v1724_v8  ;;  %427 = vmatpush.msrb.mxu0 %v189_v6  ;;  %v178_v6 = vld [vmem:[#allocation8 + $0x148] sm:$0xff] }
  0x88   :  { %468 = vmatpush.msrb.mxu1 %v190_v13  ;;  %511 = vmatpush.msrb.mxu2 %v183_v5  ;;  %v171_v13 = vld [vmem:[#allocation8 + $0x110] sm:$0xff]  ;;  %v172_v5 = vld [vmem:[#allocation8 + $0x118] sm:$0xff] }
  0x89   :  { %552 = vmatpush.msrb.mxu3 %v184_v3  ;;  %239 = vmatmul.f32.gmra.mxu0 %v1724_v8  ;;  %v173_v3 = vld [vmem:[#allocation8 + $0x120] sm:$0xff] }
  0x8a   :  { %280 = vmatmul.f32.gmra.mxu1 %v1724_v8  ;;  %428 = vmatpush.msrb.mxu0 %v185_v10  ;;  %v174_v10 = vld [vmem:[#allocation8 + $0x128] sm:$0xff] }
  0x8b   :  { %469 = vmatpush.msrb.mxu1 %v186_v11  ;;  %512 = vmatpush.msrb.mxu2 %v179_v4  ;;  %v167_v11 = vld [vmem:[#allocation8 + $0xf0] sm:$0xff]  ;;  %v168_v4 = vld [vmem:[#allocation8 + $0xf8] sm:$0xff] }
  0x8c   :  { %553 = vmatpush.msrb.mxu3 %v180_v12  ;;  %429 = vmatpush.msrb.mxu0 %v181_v2  ;;  %v1742_v12 = vld [vmem:[%s2065_s0 + $0x18] sm:$0xff]  ;;  %v169_v2 = vld [vmem:[#allocation8 + $0x100] sm:$0xff] }
  0x8d   :  { %470 = vmatpush.msrb.mxu1 %v182_v0  ;;  %513 = vmatpush.msrb.mxu2 %v175_v1  ;;  %v170_v0 = vld [vmem:[#allocation8 + $0x108] sm:$0xff]  ;;  %v163_v1 = vld [vmem:[#allocation8 + $0xd0] sm:$0xff] }
  0x8e   :  { %365 = vmatmul.f32.gmra.mxu3 %v1733_v9  ;;  %430 = vmatpush.msrb.mxu0 %v177_v14  ;;  %v165_v14 = vld [vmem:[#allocation8 + $0xe0] sm:$0xff] }
  0x8f   :  { %324 = vmatmul.f32.gmra.mxu2 %v1733_v9  ;;  %554 = vmatpush.msrb.mxu3 %v176_v15  ;;  %v164_v15 = vld [vmem:[#allocation8 + $0xd8] sm:$0xff] }
  0x90   :  { %471 = vmatpush.msrb.mxu1 %v178_v6  ;;  %514 = vmatpush.msrb.mxu2 %v171_v13  ;;  %v166_v6 = vld [vmem:[#allocation8 + $0xe8] sm:$0xff]  ;;  %v159_v13 = vld [vmem:[#allocation8 + $0xb0] sm:$0xff] }
  0x91   :  { %555 = vmatpush.msrb.mxu3 %v172_v5  ;;  %242 = vmatmul.f32.gmra.mxu0 %v1733_v9  ;;  %v160_v5 = vld [vmem:[#allocation8 + $0xb8] sm:$0xff] }
  0x92   :  { %283 = vmatmul.f32.gmra.mxu1 %v1733_v9  ;;  %431 = vmatpush.msrb.mxu0 %v173_v3  ;;  %v161_v3 = vld [vmem:[#allocation8 + $0xc0] sm:$0xff] }
  0x93   :  { %472 = vmatpush.msrb.mxu1 %v174_v10  ;;  %515 = vmatpush.msrb.mxu2 %v167_v11  ;;  %v162_v10 = vld [vmem:[#allocation8 + $0xc8] sm:$0xff]  ;;  %v155_v11 = vld [vmem:[#allocation8 + $0x90] sm:$0xff] }
  0x94   :  { %556 = vmatpush.msrb.mxu3 %v168_v4  ;;  %432 = vmatpush.msrb.mxu0 %v169_v2  ;;  %v156_v4 = vld [vmem:[#allocation8 + $0x98] sm:$0xff]  ;;  %v1751_v2 = vld [vmem:[%s2065_s0 + $0x20] sm:$0xff] }
  0x95   :  { %473 = vmatpush.msrb.mxu1 %v170_v0  ;;  %516 = vmatpush.msrb.mxu2 %v163_v1  ;;  %v157_v0 = vld [vmem:[#allocation8 + $0xa0] sm:$0xff]  ;;  %v158_v1 = vld [vmem:[#allocation8 + $0xa8] sm:$0xff] }
  0x96   :  { %368 = vmatmul.f32.gmra.mxu3 %v1742_v12  ;;  %433 = vmatpush.msrb.mxu0 %v165_v14  ;;  %v152_v14 = vld [vmem:[#allocation8 + $0x78] sm:$0xff] }
  0x97   :  { %327 = vmatmul.f32.gmra.mxu2 %v1742_v12  ;;  %557 = vmatpush.msrb.mxu3 %v164_v15  ;;  %v151_v15 = vld [vmem:[#allocation8 + $0x70] sm:$0xff] }
  0x98   :  { %474 = vmatpush.msrb.mxu1 %v166_v6  ;;  %517 = vmatpush.msrb.mxu2 %v159_v13  ;;  %v153_v6 = vld [vmem:[#allocation8 + $0x80] sm:$0xff]  ;;  %v154_v13 = vld [vmem:[#allocation8 + $0x88] sm:$0xff] }
  0x99   :  { %558 = vmatpush.msrb.mxu3 %v160_v5  ;;  %245 = vmatmul.f32.gmra.mxu0 %v1742_v12  ;;  %v147_v5 = vld [vmem:[#allocation8 + $0x50] sm:$0xff] }
  0x9a   :  { %286 = vmatmul.f32.gmra.mxu1 %v1742_v12  ;;  %434 = vmatpush.msrb.mxu0 %v161_v3  ;;  %v149_v3 = vld [vmem:[#allocation8 + $0x60] sm:$0xff] }
  0x9b   :  { %475 = vmatpush.msrb.mxu1 %v162_v10  ;;  %518 = vmatpush.msrb.mxu2 %v155_v11  ;;  %v150_v10 = vld [vmem:[#allocation8 + $0x68] sm:$0xff]  ;;  %v143_v11 = vld [vmem:[#allocation8 + $0x30] sm:$0xff] }
  0x9c   :  { %559 = vmatpush.msrb.mxu3 %v156_v4  ;;  %435 = vmatpush.msrb.mxu0 %v157_v0  ;;  %v144_v4 = vld [vmem:[#allocation8 + $0x38] sm:$0xff]  ;;  %v208_v0 = vld [vmem:[%s2065_s0 + $0x28] sm:$0xff] }
  0x9d   :  { %476 = vmatpush.msrb.mxu1 %v158_v1  ;;  %519 = vmatpush.msrb.mxu2 %v151_v15  ;;  %v145_v1 = vld [vmem:[#allocation8 + $0x40] sm:$0xff]  ;;  %v146_v15 = vld [vmem:[#allocation8 + $0x48] sm:$0xff] }
  0x9e   :  { %371 = vmatmul.f32.gmra.mxu3 %v1751_v2  ;;  %436 = vmatpush.msrb.mxu0 %v153_v6  ;;  %v140_v6 = vld [vmem:[#allocation8 + $0x18] sm:$0xff] }
  0x9f   :  { %330 = vmatmul.f32.gmra.mxu2 %v1751_v2  ;;  %560 = vmatpush.msrb.mxu3 %v152_v14  ;;  %v139_v14 = vld [vmem:[#allocation8 + $0x10] sm:$0xff] }
  0xa0   :  { %477 = vmatpush.msrb.mxu1 %v154_v13  ;;  %520 = vmatpush.msrb.mxu2 %v147_v5  ;;  %v142_v13 = vld [vmem:[#allocation8 + $0x28] sm:$0xff]  ;;  %v137_v5 = vld [vmem:[#allocation8] sm:$0xff] }
  0xa1   :  { %561 = vmatpush.msrb.mxu3 %v148_v19  ;;  %248 = vmatmul.f32.gmra.mxu0 %v1751_v2  ;;  %v141_v19 = vld [vmem:[#allocation8 + $0x20] sm:$0xff] }
  0xa2   :  { %289 = vmatmul.f32.gmra.mxu1 %v1751_v2  ;;  %437 = vmatpush.msrb.mxu0 %v149_v3  ;;  %v209_v3 = vld [vmem:[%s2065_s0 + $0x30] sm:$0xff] }
  0xa3   :  { %478 = vmatpush.msrb.mxu1 %v150_v10  ;;  %521 = vmatpush.msrb.mxu2 %v143_v11  ;;  %v210_v10 = vld [vmem:[%s2065_s0 + $0x38] sm:$0xff] }
  0xa4   :  { %562 = vmatpush.msrb.mxu3 %v144_v4  ;;  %438 = vmatpush.msrb.mxu0 %v145_v1 }
  0xa5   :  { %479 = vmatpush.msrb.mxu1 %v146_v15  ;;  %522 = vmatpush.msrb.mxu2 %v139_v14 }
  0xa6   :  { %374 = vmatmul.f32.gmra.mxu3 %v208_v0  ;;  %439 = vmatpush.msrb.mxu0 %v141_v19 }
  0xa7   :  { %333 = vmatmul.f32.gmra.mxu2 %v208_v0  ;;  %563 = vmatpush.msrb.mxu3 %v140_v6 }
  0xa8   :  { %480 = vmatpush.msrb.mxu1 %v142_v13  ;;  %440 = vmatpush.msrb.mxu0 %v137_v5 }
  0xa9   :  { %251 = vmatmul.f32.gmra.mxu0 %v208_v0 }
  0xaa   :  { %292 = vmatmul.f32.gmra.mxu1 %v208_v0 }
  0xab   :  { %481 = vmatpush.msrb.mxu1 %v138_v18  ;;  %v201_v18 = vld [vmem:[%s2067_s2] sm:$0xf] }
  0xae   :  { %377 = vmatmul.f32.gmra.mxu3 %v209_v3 }
  0xaf   :  { %336 = vmatmul.f32.gmra.mxu2 %v209_v3 }
  0xb1   :  { %254 = vmatmul.f32.gmra.mxu0 %v209_v3 }
  0xb2   :  { %295 = vmatmul.f32.gmra.mxu1 %v209_v3 }
  0xb6   :  { %380 = vmatmul.f32.gmra.mxu3 %v210_v10 }
  0xb7   :  { %339 = vmatmul.f32.gmra.mxu2 %v210_v10 }
  0xb9   :  { %257 = vmatmul.f32.gmra.mxu0 %v210_v10 }
  0xba   :  { %298 = vmatmul.f32.gmra.mxu1 %v210_v10 }
  0xbe   :  { %564 = vmatmul.f32.vlgmr.msrb.gmra.mxu3 %v1715_v7 }
  0xbf   :  { %523 = vmatmul.f32.vlgmr.msrb.gmra.mxu2 %v1715_v7 }
  0xc1   :  { %441 = vmatmul.f32.vlgmr.msrb.gmra.mxu0 %v1715_v7 }
  0xc2   :  { %482 = vmatmul.f32.vlgmr.msrb.gmra.mxu1 %v1715_v7  ;;  %v1789_v7 = vperm.slane %v201_v18, 0 }
  0xc6   :  { %567 = vmatmul.f32.gmra.mxu3 %v1724_v8 }
  0xc7   :  { %526 = vmatmul.f32.gmra.mxu2 %v1724_v8 }
  0xc9   :  { %444 = vmatmul.f32.gmra.mxu0 %v1724_v8 }
  0xca   :  { %485 = vmatmul.f32.gmra.mxu1 %v1724_v8  ;;  %v1791_v8 = vperm.slane %v201_v18, 1 }
  0xce   :  { %570 = vmatmul.f32.gmra.mxu3 %v1733_v9 }
  0xcf   :  { %529 = vmatmul.f32.gmra.mxu2 %v1733_v9 }
  0xd1   :  { %447 = vmatmul.f32.gmra.mxu0 %v1733_v9 }
  0xd2   :  { %488 = vmatmul.f32.gmra.mxu1 %v1733_v9  ;;  %v1793_v9 = vperm.slane %v201_v18, 2 }
  0xd6   :  { %573 = vmatmul.f32.gmra.mxu3 %v1742_v12 }
  0xd7   :  { %532 = vmatmul.f32.gmra.mxu2 %v1742_v12 }
  0xd9   :  { %450 = vmatmul.f32.gmra.mxu0 %v1742_v12 }
  0xda   :  { %491 = vmatmul.f32.gmra.mxu1 %v1742_v12  ;;  %v1795_v12 = vperm.slane %v201_v18, 3 }
  0xde   :  { %576 = vmatmul.f32.gmra.mxu3 %v1751_v2 }
  0xdf   :  { %535 = vmatmul.f32.gmra.mxu2 %v1751_v2 }
  0xe1   :  { %453 = vmatmul.f32.gmra.mxu0 %v1751_v2 }
  0xe2   :  { %494 = vmatmul.f32.gmra.mxu1 %v1751_v2 }
  0xe6   :  { %579 = vmatmul.f32.gmra.mxu3 %v208_v0 }
  0xe7   :  { %538 = vmatmul.f32.gmra.mxu2 %v208_v0 }
  0xe9   :  { %456 = vmatmul.f32.gmra.mxu0 %v208_v0 }
  0xea   :  { %497 = vmatmul.f32.gmra.mxu1 %v208_v0 }
  0xee   :  { %582 = vmatmul.f32.gmra.mxu3 %v209_v3 }
  0xef   :  { %541 = vmatmul.f32.gmra.mxu2 %v209_v3 }
  0xf1   :  { %459 = vmatmul.f32.gmra.mxu0 %v209_v3 }
  0xf2   :  { %500 = vmatmul.f32.gmra.mxu1 %v209_v3 }
  0xf6   :  { %585 = vmatmul.f32.gmra.mxu3 %v210_v10 }
  0xf7   :  { %544 = vmatmul.f32.gmra.mxu2 %v210_v10 }
  0xf9   :  { %462 = vmatmul.f32.gmra.mxu0 %v210_v10 }
  0xfa   :  { %503 = vmatmul.f32.gmra.mxu1 %v210_v10  ;;  %v278_v11 = vpop.f32.mrf.mxu1 }
  0xfb   :  { %v279_v0 = vadd.f32 %v278_v11, %v1791_v8 }
  0xfd   :  { %385 = vst [vmem:[#allocation2 + $0x8] sm:$0xff] %v279_v0 }
  0xfe   :  { %v237_v2 = vpop.f32.mrf.mxu0 }
  0xff   :  { %v238_v4 = vadd.f32 %v237_v2, %v1789_v7 }
 0x101   :  { %v360_v14 = vpop.f32.mrf.mxu3  ;;  %384 = vst [vmem:[#allocation2] sm:$0xff] %v238_v4 }
 0x102   :  { %v319_v1 = vpop.f32.mrf.mxu2  ;;  %v361_v6 = vadd.f32 %v360_v14, %v1795_v12 }
 0x103   :  { %v320_v15 = vadd.f32 %v319_v1, %v1793_v9 }
 0x104   :  { %387 = vst [vmem:[#allocation2 + $0x18] sm:$0xff] %v361_v6 }
 0x105   :  { %386 = vst [vmem:[#allocation2 + $0x10] sm:$0xff] %v320_v15 }
 0x106   :  { %v240_v19 = vpop.f32.mrf.mxu0 }
 0x107   :  { %v281_v13 = vpop.f32.mrf.mxu1  ;;  %v241_v5 = vadd.f32 %v240_v19, %v1789_v7 }
 0x108   :  { %v282_v3 = vadd.f32 %v281_v13, %v1791_v8 }
 0x109   :  { %v363_v2 = vpop.f32.mrf.mxu3  ;;  %388 = vst [vmem:[#allocation2 + $0x20] sm:$0xff] %v241_v5 }
 0x10a   :  { %v322_v10 = vpop.f32.mrf.mxu2  ;;  %v364_v11 = vadd.f32 %v363_v2, %v1795_v12  ;;  %389 = vst [vmem:[#allocation2 + $0x28] sm:$0xff] %v282_v3 }
 0x10b   :  { %v323_v18 = vadd.f32 %v322_v10, %v1793_v9 }
 0x10c   :  { %391 = vst [vmem:[#allocation2 + $0x38] sm:$0xff] %v364_v11 }
 0x10d   :  { %390 = vst [vmem:[#allocation2 + $0x30] sm:$0xff] %v323_v18 }
 0x10e   :  { %v243_v4 = vpop.f32.mrf.mxu0 }
 0x10f   :  { %v284_v0 = vpop.f32.mrf.mxu1  ;;  %v244_v1 = vadd.f32 %v243_v4, %v1789_v7 }
 0x110   :  { %v285_v15 = vadd.f32 %v284_v0, %v1791_v8 }
 0x111   :  { %v366_v19 = vpop.f32.mrf.mxu3  ;;  %392 = vst [vmem:[#allocation2 + $0x40] sm:$0xff] %v244_v1 }
 0x112   :  { %v325_v14 = vpop.f32.mrf.mxu2  ;;  %v367_v13 = vadd.f32 %v366_v19, %v1795_v12  ;;  %393 = vst [vmem:[#allocation2 + $0x48] sm:$0xff] %v285_v15 }
 0x113   :  { %v326_v6 = vadd.f32 %v325_v14, %v1793_v9 }
 0x114   :  { %395 = vst [vmem:[#allocation2 + $0x58] sm:$0xff] %v367_v13 }
 0x115   :  { %394 = vst [vmem:[#allocation2 + $0x50] sm:$0xff] %v326_v6 }
 0x116   :  { %v246_v5 = vpop.f32.mrf.mxu0 }
 0x117   :  { %v287_v3 = vpop.f32.mrf.mxu1  ;;  %v247_v10 = vadd.f32 %v246_v5, %v1789_v7 }
 0x118   :  { %v288_v18 = vadd.f32 %v287_v3, %v1791_v8 }
 0x119   :  { %v369_v4 = vpop.f32.mrf.mxu3  ;;  %396 = vst [vmem:[#allocation2 + $0x60] sm:$0xff] %v247_v10 }
 0x11a   :  { %v328_v2 = vpop.f32.mrf.mxu2  ;;  %v370_v0 = vadd.f32 %v369_v4, %v1795_v12  ;;  %397 = vst [vmem:[#allocation2 + $0x68] sm:$0xff] %v288_v18 }
 0x11b   :  { %v329_v11 = vadd.f32 %v328_v2, %v1793_v9 }
 0x11c   :  { %399 = vst [vmem:[#allocation2 + $0x78] sm:$0xff] %v370_v0 }
 0x11d   :  { %398 = vst [vmem:[#allocation2 + $0x70] sm:$0xff] %v329_v11 }
 0x11e   :  { %v249_v1 = vpop.f32.mrf.mxu0 }
 0x11f   :  { %v290_v15 = vpop.f32.mrf.mxu1  ;;  %v250_v14 = vadd.f32 %v249_v1, %v1789_v7 }
 0x120   :  { %v291_v6 = vadd.f32 %v290_v15, %v1791_v8 }
 0x121   :  { %v372_v5 = vpop.f32.mrf.mxu3  ;;  %400 = vst [vmem:[#allocation2 + $0x80] sm:$0xff] %v250_v14 }
 0x122   :  { %v331_v19 = vpop.f32.mrf.mxu2  ;;  %v373_v3 = vadd.f32 %v372_v5, %v1795_v12  ;;  %401 = vst [vmem:[#allocation2 + $0x88] sm:$0xff] %v291_v6 }
 0x123   :  { %v332_v13 = vadd.f32 %v331_v19, %v1793_v9 }
 0x124   :  { %403 = vst [vmem:[#allocation2 + $0x98] sm:$0xff] %v373_v3 }
 0x125   :  { %402 = vst [vmem:[#allocation2 + $0x90] sm:$0xff] %v332_v13 }
 0x126   :  { %v252_v10 = vpop.f32.mrf.mxu0 }
 0x127   :  { %v293_v18 = vpop.f32.mrf.mxu1  ;;  %v253_v2 = vadd.f32 %v252_v10, %v1789_v7 }
 0x128   :  { %v294_v11 = vadd.f32 %v293_v18, %v1791_v8 }
 0x129   :  { %v375_v1 = vpop.f32.mrf.mxu3  ;;  %404 = vst [vmem:[#allocation2 + $0xa0] sm:$0xff] %v253_v2 }
 0x12a   :  { %v334_v4 = vpop.f32.mrf.mxu2  ;;  %v376_v15 = vadd.f32 %v375_v1, %v1795_v12  ;;  %405 = vst [vmem:[#allocation2 + $0xa8] sm:$0xff] %v294_v11 }
 0x12b   :  { %v335_v0 = vadd.f32 %v334_v4, %v1793_v9 }
 0x12c   :  { %407 = vst [vmem:[#allocation2 + $0xb8] sm:$0xff] %v376_v15 }
 0x12d   :  { %406 = vst [vmem:[#allocation2 + $0xb0] sm:$0xff] %v335_v0 }
 0x12e   :  { %v255_v14 = vpop.f32.mrf.mxu0 }
 0x12f   :  { %v296_v6 = vpop.f32.mrf.mxu1  ;;  %v256_v19 = vadd.f32 %v255_v14, %v1789_v7 }
 0x130   :  { %v297_v13 = vadd.f32 %v296_v6, %v1791_v8  ;;  %v202_v6 = vld [vmem:[%s2070_s5] sm:$0xf]  ;;  %s1880_s5 = smov 0  }
 0x131   :  { %v378_v10 = vpop.f32.mrf.mxu3  ;;  %408 = vst [vmem:[#allocation2 + $0xc0] sm:$0xff] %v256_v19 }
 0x132   :  { %v337_v5 = vpop.f32.mrf.mxu2  ;;  %v379_v18 = vadd.f32 %v378_v10, %v1795_v12  ;;  %409 = vst [vmem:[#allocation2 + $0xc8] sm:$0xff] %v297_v13  ;;  %v1832_v13 = vperm.slane %v202_v6, 0 }
 0x133   :  { %v338_v3 = vadd.f32 %v337_v5, %v1793_v9  ;;  %v1834_v5 = vperm.slane %v202_v6, 1 }
 0x134   :  { %411 = vst [vmem:[#allocation2 + $0xd8] sm:$0xff] %v379_v18 }
 0x135   :  { %410 = vst [vmem:[#allocation2 + $0xd0] sm:$0xff] %v338_v3 }
 0x136   :  { %v258_v2 = vpop.f32.mrf.mxu0 }
 0x137   :  { %v299_v11 = vpop.f32.mrf.mxu1  ;;  %v259_v4 = vadd.f32 %v258_v2, %v1789_v7  ;;  %v1836_v7 = vperm.slane %v202_v6, 2 }
 0x138   :  { %v300_v0 = vadd.f32 %v299_v11, %v1791_v8  ;;  %v1838_v8 = vperm.slane %v202_v6, 3 }
 0x139   :  { %v381_v14 = vpop.f32.mrf.mxu3  ;;  %412 = vst [vmem:[#allocation2 + $0xe0] sm:$0xff] %v259_v4 }
 0x13a   :  { %v340_v1 = vpop.f32.mrf.mxu2  ;;  %v382_v19 = vadd.f32 %v381_v14, %v1795_v12  ;;  %413 = vst [vmem:[#allocation2 + $0xe8] sm:$0xff] %v300_v0 }
 0x13b   :  { %v341_v15 = vadd.f32 %v340_v1, %v1793_v9 }
 0x13c   :  { %415 = vst [vmem:[#allocation2 + $0xf8] sm:$0xff] %v382_v19 }
 0x13d   :  { %414 = vst [vmem:[#allocation2 + $0xf0] sm:$0xff] %v341_v15 }
 0x13e   :  { %v442_v9 = vpop.f32.mrf.mxu0 }
 0x13f   :  { %v483_v3 = vpop.f32.mrf.mxu1  ;;  %v443_v10 = vadd.f32 %v442_v9, %v1832_v13 }
 0x140   :  { %v484_v18 = vadd.f32 %v483_v3, %v1834_v5 }
 0x141   :  { %v565_v11 = vpop.f32.mrf.mxu3  ;;  %589 = vst [vmem:[#allocation3] sm:$0xff] %v443_v10 }
 0x142   :  { %v524_v2 = vpop.f32.mrf.mxu2  ;;  %v566_v4 = vadd.f32 %v565_v11, %v1838_v8  ;;  %590 = vst [vmem:[#allocation3 + $0x8] sm:$0xff] %v484_v18 }
 0x143   :  { %v525_v12 = vadd.f32 %v524_v2, %v1836_v7 }
 0x144   :  { %592 = vst [vmem:[#allocation3 + $0x18] sm:$0xff] %v566_v4 }
 0x145   :  { %591 = vst [vmem:[#allocation3 + $0x10] sm:$0xff] %v525_v12 }
 0x146   :  { %v445_v0 = vpop.f32.mrf.mxu0 }
 0x147   :  { %v486_v1 = vpop.f32.mrf.mxu1  ;;  %v446_v15 = vadd.f32 %v445_v0, %v1832_v13 }
 0x148   :  { %v487_v14 = vadd.f32 %v486_v1, %v1834_v5 }
 0x149   :  { %v568_v9 = vpop.f32.mrf.mxu3  ;;  %593 = vst [vmem:[#allocation3 + $0x20] sm:$0xff] %v446_v15 }
 0x14a   :  { %v527_v6 = vpop.f32.mrf.mxu2  ;;  %v569_v3 = vadd.f32 %v568_v9, %v1838_v8  ;;  %594 = vst [vmem:[#allocation3 + $0x28] sm:$0xff] %v487_v14 }
 0x14b   :  { %v528_v19 = vadd.f32 %v527_v6, %v1836_v7 }
 0x14c   :  { %596 = vst [vmem:[#allocation3 + $0x38] sm:$0xff] %v569_v3 }
 0x14d   :  { %595 = vst [vmem:[#allocation3 + $0x30] sm:$0xff] %v528_v19 }
 0x14e   :  { %v448_v10 = vpop.f32.mrf.mxu0 }
 0x14f   :  { %v489_v18 = vpop.f32.mrf.mxu1  ;;  %v449_v2 = vadd.f32 %v448_v10, %v1832_v13 }
 0x150   :  { %v490_v12 = vadd.f32 %v489_v18, %v1834_v5 }
 0x151   :  { %v571_v0 = vpop.f32.mrf.mxu3  ;;  %597 = vst [vmem:[#allocation3 + $0x40] sm:$0xff] %v449_v2 }
 0x152   :  { %v530_v11 = vpop.f32.mrf.mxu2  ;;  %v572_v1 = vadd.f32 %v571_v0, %v1838_v8  ;;  %598 = vst [vmem:[#allocation3 + $0x48] sm:$0xff] %v490_v12 }
 0x153   :  { %v531_v4 = vadd.f32 %v530_v11, %v1836_v7 }
 0x154   :  { %600 = vst [vmem:[#allocation3 + $0x58] sm:$0xff] %v572_v1 }
 0x155   :  { %599 = vst [vmem:[#allocation3 + $0x50] sm:$0xff] %v531_v4 }
 0x156   :  { %v451_v15 = vpop.f32.mrf.mxu0 }
 0x157   :  { %v492_v14 = vpop.f32.mrf.mxu1  ;;  %v452_v6 = vadd.f32 %v451_v15, %v1832_v13 }
 0x158   :  { %v493_v19 = vadd.f32 %v492_v14, %v1834_v5 }
 0x159   :  { %v574_v10 = vpop.f32.mrf.mxu3  ;;  %601 = vst [vmem:[#allocation3 + $0x60] sm:$0xff] %v452_v6 }
 0x15a   :  { %v533_v9 = vpop.f32.mrf.mxu2  ;;  %v575_v18 = vadd.f32 %v574_v10, %v1838_v8  ;;  %602 = vst [vmem:[#allocation3 + $0x68] sm:$0xff] %v493_v19 }
 0x15b   :  { %v534_v3 = vadd.f32 %v533_v9, %v1836_v7 }
 0x15c   :  { %604 = vst [vmem:[#allocation3 + $0x78] sm:$0xff] %v575_v18 }
 0x15d   :  { %603 = vst [vmem:[#allocation3 + $0x70] sm:$0xff] %v534_v3 }
 0x15e   :  { %v454_v2 = vpop.f32.mrf.mxu0 }
 0x15f   :  { %v495_v12 = vpop.f32.mrf.mxu1  ;;  %v455_v11 = vadd.f32 %v454_v2, %v1832_v13 }
 0x160   :  { %v496_v4 = vadd.f32 %v495_v12, %v1834_v5 }
 0x161   :  { %v577_v15 = vpop.f32.mrf.mxu3  ;;  %605 = vst [vmem:[#allocation3 + $0x80] sm:$0xff] %v455_v11 }
 0x162   :  { %v536_v0 = vpop.f32.mrf.mxu2  ;;  %v578_v14 = vadd.f32 %v577_v15, %v1838_v8  ;;  %606 = vst [vmem:[#allocation3 + $0x88] sm:$0xff] %v496_v4 }
 0x163   :  { %v537_v1 = vadd.f32 %v536_v0, %v1836_v7 }
 0x164   :  { %608 = vst [vmem:[#allocation3 + $0x98] sm:$0xff] %v578_v14 }
 0x165   :  { %607 = vst [vmem:[#allocation3 + $0x90] sm:$0xff] %v537_v1 }
 0x166   :  { %v457_v6 = vpop.f32.mrf.mxu0 }
 0x167   :  { %v498_v19 = vpop.f32.mrf.mxu1  ;;  %v458_v9 = vadd.f32 %v457_v6, %v1832_v13 }
 0x168   :  { %v499_v3 = vadd.f32 %v498_v19, %v1834_v5 }
 0x169   :  { %v580_v2 = vpop.f32.mrf.mxu3  ;;  %609 = vst [vmem:[#allocation3 + $0xa0] sm:$0xff] %v458_v9 }
 0x16a   :  { %v539_v10 = vpop.f32.mrf.mxu2  ;;  %v581_v12 = vadd.f32 %v580_v2, %v1838_v8  ;;  %610 = vst [vmem:[#allocation3 + $0xa8] sm:$0xff] %v499_v3 }
 0x16b   :  { %v540_v18 = vadd.f32 %v539_v10, %v1836_v7 }
 0x16c   :  { %612 = vst [vmem:[#allocation3 + $0xb8] sm:$0xff] %v581_v12 }
 0x16d   :  { %611 = vst [vmem:[#allocation3 + $0xb0] sm:$0xff] %v540_v18 }
 0x16e   :  { %v460_v11 = vpop.f32.mrf.mxu0 }
 0x16f   :  { %v501_v4 = vpop.f32.mrf.mxu1  ;;  %v461_v0 = vadd.f32 %v460_v11, %v1832_v13 }
 0x170   :  { %v502_v1 = vadd.f32 %v501_v4, %v1834_v5 }
 0x171   :  { %v583_v6 = vpop.f32.mrf.mxu3  ;;  %613 = vst [vmem:[#allocation3 + $0xc0] sm:$0xff] %v461_v0  ;;  %v1872_v0 = vmov 0.0  }
 0x172   :  { %v542_v15 = vpop.f32.mrf.mxu2  ;;  %v584_v19 = vadd.f32 %v583_v6, %v1838_v8  ;;  %614 = vst [vmem:[#allocation3 + $0xc8] sm:$0xff] %v502_v1  ;;  %v1874_v1 = vmov 0.0  }
 0x173   :  { %v543_v14 = vadd.f32 %v542_v15, %v1836_v7  ;;  %v1876_v15 = vmov 0.0  }
 0x174   :  { %616 = vst [vmem:[#allocation3 + $0xd8] sm:$0xff] %v584_v19 }
 0x175   :  { %615 = vst [vmem:[#allocation3 + $0xd0] sm:$0xff] %v543_v14  ;;  %v1878_v14 = vmov 0.0  }
 0x176   :  { %v463_v9 = vpop.f32.mrf.mxu0 }
 0x177   :  { %v504_v3 = vpop.f32.mrf.mxu1  ;;  %v464_v10 = vadd.f32 %v463_v9, %v1832_v13 }
 0x178   :  { %v505_v18 = vadd.f32 %v504_v3, %v1834_v5 }
 0x179   :  { %v586_v11 = vpop.f32.mrf.mxu3  ;;  %617 = vst [vmem:[#allocation3 + $0xe0] sm:$0xff] %v464_v10 }
 0x17a   :  { %v545_v2 = vpop.f32.mrf.mxu2  ;;  %v587_v4 = vadd.f32 %v586_v11, %v1838_v8  ;;  %618 = vst [vmem:[#allocation3 + $0xe8] sm:$0xff] %v505_v18 }
 0x17b   :  { %v546_v12 = vadd.f32 %v545_v2, %v1836_v7 }
 0x17c   :  { %620 = vst [vmem:[#allocation3 + $0xf8] sm:$0xff] %v587_v4 }
 0x17d   :  { %619 = vst [vmem:[#allocation3 + $0xf0] sm:$0xff] %v546_v12 }
 0x17e LB: > { %767 = vmatpush.msra.mxu0 %v1384_v60  ;;  %787 = vmatpush.msra.mxu1 %v1386_v61  ;;  %v2159_v20 = vld [vmem:[#allocation31_spill] sm:$0xff]  ;;  %v2160_v21 = vld [vmem:[#allocation32_spill] sm:$0xff]  ;;  %v2163_v13 = vld [vmem:[#allocation29_spill] sm:$0xff]  ;;  %s1025_s30 = sshll.u32 %s1208_s5, 5  ;;  %s759_s9 = ssub.s32 7, %s1208_s5  ;;  %s1208_s5 = sphi %s1880_s5, %s754_s5   ;;  %v1204_v14 = vphi %v1878_v14, %v2245_v14   ;;  %v1200_v15 = vphi %v1876_v15, %v957_v15   ;;  %v1196_v1 = vphi %v1874_v1, %v977_v1   ;;  %v1192_v0 = vphi %v1872_v0, %v975_v0  }
 0x17f   : > { %807 = vmatpush.msra.mxu2 %v1388_v62  ;;  %827 = vmatpush.msra.mxu3 %v1390_v63  ;;  %v2161_v16 = vld [vmem:[#allocation27_spill] sm:$0xff]  ;;  %v2162_v17 = vld [vmem:[#allocation28_spill] sm:$0xff]  ;;  %v2164_v5 = vld [vmem:[#allocation30_spill] sm:$0xff]  ;;  %s762_s8 = scalar_lea.vmem [#allocation2], %s1025_s30  ;;  %s1026_s10 = sshll.u32 %s759_s9, 5 }
 0x180   : > { %768 = vmatpush.msra.mxu0 %v1376_v56  ;;  %788 = vmatpush.msra.mxu1 %v1378_v57  ;;  %v2165_v7 = vld [vmem:[#allocation23_spill] sm:$0xff]  ;;  %v2166_v8 = vld [vmem:[#allocation24_spill] sm:$0xff]  ;;  %v2167_v6 = vld [vmem:[#allocation25_spill] sm:$0xff]  ;;  %s2037_s11 = scalar_lea.vmem [#allocation3], %s1026_s10  ;;  %s1027_s12 = sshll.u32 %s1208_s5, 4 }
 0x181   : > { %808 = vmatpush.msra.mxu2 %v1380_v58  ;;  %828 = vmatpush.msra.mxu3 %v1382_v59  ;;  %v2168_v19 = vld [vmem:[#allocation26_spill] sm:$0xff]  ;;  %v2169_v9 = vld [vmem:[#allocation19_spill] sm:$0xff]  ;;  %v2170_v3 = vld [vmem:[#allocation20_spill] sm:$0xff]  ;;  %s980_s15 = scalar_lea.vmem %s2072_s7, %s1027_s12  ;;  %s1028_s6 = sshll.u32 %s759_s9, 4 }
 0x182   : > { %769 = vmatpush.msra.mxu0 %v1368_v52  ;;  %789 = vmatpush.msra.mxu1 %v1370_v53  ;;  %v2171_v10 = vld [vmem:[#allocation21_spill] sm:$0xff]  ;;  %v2172_v18 = vld [vmem:[#allocation22_spill] sm:$0xff]  ;;  %v2173_v2 = vld [vmem:[#allocation15_spill] sm:$0xff]  ;;  %s984_s1 = scalar_lea.vmem %s2072_s7, %s1028_s6  ;;  %s754_s5 = sadd.s32 1, %s1208_s5  }
 0x183   : > { %809 = vmatpush.msra.mxu2 %v1372_v54  ;;  %829 = vmatpush.msra.mxu3 %v1374_v55  ;;  %v2174_v12 = vld [vmem:[#allocation16_spill] sm:$0xff]  ;;  %v2175_v11 = vld [vmem:[#allocation17_spill] sm:$0xff]  ;;  %v2176_v4 = vld [vmem:[#allocation18_spill] sm:$0xff]  ;;  %p751_p0 = scmp.ge.s32.totalorder %s754_s5, 8  }
 0x184   : > { %770 = vmatpush.msra.mxu0 %v1360_v48  ;;  %790 = vmatpush.msra.mxu1 %v1362_v49 }
 0x185   : > { %810 = vmatpush.msra.mxu2 %v1364_v50  ;;  %830 = vmatpush.msra.mxu3 %v1366_v51 }
 0x186   : > { %771 = vmatpush.msra.mxu0 %v1352_v44  ;;  %791 = vmatpush.msra.mxu1 %v1354_v45 }
 0x187   : > { %811 = vmatpush.msra.mxu2 %v1356_v46  ;;  %831 = vmatpush.msra.mxu3 %v1358_v47 }
 0x188   : > { %772 = vmatpush.msra.mxu0 %v1344_v40  ;;  %792 = vmatpush.msra.mxu1 %v1346_v41 }
 0x189   : > { %812 = vmatpush.msra.mxu2 %v1348_v42  ;;  %832 = vmatpush.msra.mxu3 %v1350_v43 }
 0x18a   : > { %773 = vmatpush.msra.mxu0 %v1336_v36  ;;  %793 = vmatpush.msra.mxu1 %v1338_v37 }
 0x18b   : > { %813 = vmatpush.msra.mxu2 %v1340_v38  ;;  %833 = vmatpush.msra.mxu3 %v1342_v39 }
 0x18c   : > { %774 = vmatpush.msra.mxu0 %v1328_v32  ;;  %794 = vmatpush.msra.mxu1 %v1330_v33 }
 0x18d   : > { %814 = vmatpush.msra.mxu2 %v1332_v34  ;;  %834 = vmatpush.msra.mxu3 %v1334_v35 }
 0x18e   : > { %775 = vmatpush.msra.mxu0 %v1320_v28  ;;  %795 = vmatpush.msra.mxu1 %v1322_v29 }
 0x18f   : > { %815 = vmatpush.msra.mxu2 %v1324_v30  ;;  %835 = vmatpush.msra.mxu3 %v1326_v31 }
 0x190   : > { %776 = vmatpush.msra.mxu0 %v1312_v24  ;;  %796 = vmatpush.msra.mxu1 %v1314_v25 }
 0x191   : > { %816 = vmatpush.msra.mxu2 %v1316_v26  ;;  %836 = vmatpush.msra.mxu3 %v1318_v27 }
 0x192   : > { %777 = vmatpush.msra.mxu0 %v2159_v20  ;;  %797 = vmatpush.msra.mxu1 %v2160_v21 }
 0x193   : > { %817 = vmatpush.msra.mxu2 %v1308_v22  ;;  %837 = vmatpush.msra.mxu3 %v1310_v23 }
 0x194   : > { %778 = vmatpush.msra.mxu0 %v2161_v16  ;;  %798 = vmatpush.msra.mxu1 %v2162_v17 }
 0x195   : > { %818 = vmatpush.msra.mxu2 %v2163_v13  ;;  %838 = vmatpush.msra.mxu3 %v2164_v5  ;;  %v2177_v13 = vld [vmem:[#allocation11_spill] sm:$0xff]  ;;  %v2178_v5 = vld [vmem:[#allocation12_spill] sm:$0xff] }
 0x196   : > { %779 = vmatpush.msra.mxu0 %v2165_v7  ;;  %799 = vmatpush.msra.mxu1 %v2166_v8  ;;  %v2179_v7 = vld [vmem:[#allocation13_spill] sm:$0xff] }
 0x197   : > { %819 = vmatpush.msra.mxu2 %v2167_v6  ;;  %839 = vmatpush.msra.mxu3 %v2168_v19  ;;  %v2180_v8 = vld [vmem:[#allocation93_spill] sm:$0xff]  ;;  %v2181_v6 = vld [vmem:[#allocation94_spill] sm:$0xff]  ;;  %v2182_v19 = vld [vmem:[#allocation95_spill] sm:$0xff] }
 0x198   : > { %780 = vmatpush.msra.mxu0 %v2169_v9  ;;  %800 = vmatpush.msra.mxu1 %v2170_v3  ;;  %v2183_v9 = vld [vmem:[#allocation89_spill] sm:$0xff]  ;;  %v2184_v3 = vld [vmem:[#allocation14_spill] sm:$0xff] }
 0x199   : > { %820 = vmatpush.msra.mxu2 %v2171_v10  ;;  %840 = vmatpush.msra.mxu3 %v2172_v18  ;;  %v2185_v10 = vld [vmem:[#allocation90_spill] sm:$0xff]  ;;  %v2186_v18 = vld [vmem:[#allocation91_spill] sm:$0xff] }
 0x19a   : > { %781 = vmatpush.msra.mxu0 %v2173_v2  ;;  %801 = vmatpush.msra.mxu1 %v2174_v12  ;;  %v2187_v2 = vld [vmem:[#allocation85_spill] sm:$0xff]  ;;  %v2188_v12 = vld [vmem:[#allocation96_spill] sm:$0xff] }
 0x19b   : > { %821 = vmatpush.msra.mxu2 %v2175_v11  ;;  %841 = vmatpush.msra.mxu3 %v2176_v4  ;;  %v2189_v11 = vld [vmem:[#allocation86_spill] sm:$0xff]  ;;  %v2190_v4 = vld [vmem:[#allocation87_spill] sm:$0xff] }
 0x19c   : > { %782 = vmatpush.msra.mxu0 %v2177_v13  ;;  %802 = vmatpush.msra.mxu1 %v2178_v5  ;;  %v2191_v13 = vld [vmem:[#allocation81_spill] sm:$0xff]  ;;  %v2192_v5 = vld [vmem:[#allocation92_spill] sm:$0xff] }
 0x19d   : > { %822 = vmatpush.msra.mxu2 %v2179_v7  ;;  %842 = vmatpush.msra.mxu3 %v2184_v3  ;;  %v2193_v7 = vld [vmem:[#allocation82_spill] sm:$0xff]  ;;  %v2198_v3 = vld [vmem:[#allocation79_spill] sm:$0xff] }
 0x19e   : > { %858 = vmatpush.msrb.mxu0 %v2180_v8  ;;  %878 = vmatpush.msrb.mxu1 %v2181_v6  ;;  %v2194_v8 = vld [vmem:[#allocation83_spill] sm:$0xff]  ;;  %v2195_v6 = vld [vmem:[#allocation77_spill] sm:$0xff] }
 0x19f   : > { %898 = vmatpush.msrb.mxu2 %v2182_v19  ;;  %918 = vmatpush.msrb.mxu3 %v2188_v12  ;;  %v2196_v19 = vld [vmem:[#allocation88_spill] sm:$0xff]  ;;  %v2202_v12 = vld [vmem:[#allocation75_spill] sm:$0xff] }
 0x1a0   : > { %859 = vmatpush.msrb.mxu0 %v2183_v9  ;;  %879 = vmatpush.msrb.mxu1 %v2185_v10  ;;  %v2197_v9 = vld [vmem:[#allocation78_spill] sm:$0xff]  ;;  %v2199_v10 = vld [vmem:[#allocation73_spill] sm:$0xff] }
 0x1a1   : > { %899 = vmatpush.msrb.mxu2 %v2186_v18  ;;  %919 = vmatpush.msrb.mxu3 %v2192_v5  ;;  %v2200_v18 = vld [vmem:[#allocation84_spill] sm:$0xff]  ;;  %v2206_v5 = vld [vmem:[#allocation71_spill] sm:$0xff] }
 0x1a2   : > { %860 = vmatpush.msrb.mxu0 %v2187_v2  ;;  %880 = vmatpush.msrb.mxu1 %v2189_v11  ;;  %v2201_v2 = vld [vmem:[#allocation74_spill] sm:$0xff]  ;;  %v2203_v11 = vld [vmem:[#allocation69_spill] sm:$0xff] }
 0x1a3   : > { %900 = vmatpush.msrb.mxu2 %v2190_v4  ;;  %920 = vmatpush.msrb.mxu3 %v2196_v19  ;;  %v2204_v4 = vld [vmem:[#allocation80_spill] sm:$0xff]  ;;  %v2210_v19 = vld [vmem:[#allocation67_spill] sm:$0xff] }
 0x1a4   : > { %861 = vmatpush.msrb.mxu0 %v2191_v13  ;;  %881 = vmatpush.msrb.mxu1 %v2193_v7  ;;  %v2205_v13 = vld [vmem:[#allocation70_spill] sm:$0xff]  ;;  %v2207_v7 = vld [vmem:[#allocation65_spill] sm:$0xff] }
 0x1a5   : > { %901 = vmatpush.msrb.mxu2 %v2194_v8  ;;  %921 = vmatpush.msrb.mxu3 %v2200_v18  ;;  %v2208_v8 = vld [vmem:[#allocation76_spill] sm:$0xff]  ;;  %v2214_v18 = vld [vmem:[#allocation63_spill] sm:$0xff] }
 0x1a6   : > { %862 = vmatpush.msrb.mxu0 %v2195_v6  ;;  %882 = vmatpush.msrb.mxu1 %v2197_v9  ;;  %v2209_v6 = vld [vmem:[#allocation66_spill] sm:$0xff]  ;;  %v2211_v9 = vld [vmem:[#allocation61_spill] sm:$0xff] }
 0x1a7   : > { %902 = vmatpush.msrb.mxu2 %v2198_v3  ;;  %922 = vmatpush.msrb.mxu3 %v2204_v4  ;;  %v2212_v3 = vld [vmem:[#allocation72_spill] sm:$0xff]  ;;  %v2218_v4 = vld [vmem:[#allocation59_spill] sm:$0xff] }
 0x1a8   : > { %863 = vmatpush.msrb.mxu0 %v2199_v10  ;;  %883 = vmatpush.msrb.mxu1 %v2201_v2  ;;  %v2213_v10 = vld [vmem:[#allocation62_spill] sm:$0xff]  ;;  %v2215_v2 = vld [vmem:[#allocation57_spill] sm:$0xff] }
 0x1a9   : > { %903 = vmatpush.msrb.mxu2 %v2202_v12  ;;  %923 = vmatpush.msrb.mxu3 %v2208_v8  ;;  %v2216_v12 = vld [vmem:[#allocation68_spill] sm:$0xff]  ;;  %v2222_v8 = vld [vmem:[#allocation55_spill] sm:$0xff] }
 0x1aa   : > { %864 = vmatpush.msrb.mxu0 %v2203_v11  ;;  %884 = vmatpush.msrb.mxu1 %v2205_v13  ;;  %v2217_v11 = vld [vmem:[#allocation58_spill] sm:$0xff]  ;;  %v2219_v13 = vld [vmem:[#allocation53_spill] sm:$0xff] }
 0x1ab   : > { %904 = vmatpush.msrb.mxu2 %v2206_v5  ;;  %924 = vmatpush.msrb.mxu3 %v2212_v3  ;;  %v2220_v5 = vld [vmem:[#allocation64_spill] sm:$0xff] }
 0x1ac   : > { %865 = vmatpush.msrb.mxu0 %v2207_v7  ;;  %885 = vmatpush.msrb.mxu1 %v2209_v6  ;;  %v2221_v7 = vld [vmem:[#allocation54_spill] sm:$0xff]  ;;  %v2223_v6 = vld [vmem:[#allocation49_spill] sm:$0xff]  ;;  %v2226_v3 = vld [vmem:[#allocation60_spill] sm:$0xff] }
 0x1ad   : > { %905 = vmatpush.msrb.mxu2 %v2210_v19  ;;  %925 = vmatpush.msrb.mxu3 %v2216_v12  ;;  %v2224_v19 = vld [vmem:[#allocation50_spill] sm:$0xff]  ;;  %v2230_v12 = vld [vmem:[#allocation56_spill] sm:$0xff] }
 0x1ae   : > { %866 = vmatpush.msrb.mxu0 %v2211_v9  ;;  %886 = vmatpush.msrb.mxu1 %v2213_v10  ;;  %v2225_v9 = vld [vmem:[#allocation51_spill] sm:$0xff]  ;;  %v2227_v10 = vld [vmem:[#allocation45_spill] sm:$0xff] }
 0x1af   : > { %906 = vmatpush.msrb.mxu2 %v2214_v18  ;;  %926 = vmatpush.msrb.mxu3 %v2220_v5  ;;  %v2228_v18 = vld [vmem:[#allocation46_spill] sm:$0xff]  ;;  %v2234_v5 = vld [vmem:[#allocation52_spill] sm:$0xff] }
 0x1b0   : > { %867 = vmatpush.msrb.mxu0 %v2215_v2  ;;  %887 = vmatpush.msrb.mxu1 %v2217_v11  ;;  %v2229_v2 = vld [vmem:[#allocation47_spill] sm:$0xff]  ;;  %v2231_v11 = vld [vmem:[#allocation41_spill] sm:$0xff] }
 0x1b1   : > { %907 = vmatpush.msrb.mxu2 %v2218_v4  ;;  %803 = vmatmul.f32.vlgmr.msra.gmra.mxu1 %v1204_v14  ;;  %v2232_v4 = vld [vmem:[#allocation42_spill] sm:$0xff] }
 0x1b2   : > { %868 = vmatpush.msrb.mxu0 %v2219_v13  ;;  %888 = vmatpush.msrb.mxu1 %v2221_v7  ;;  %v2233_v13 = vld [vmem:[#allocation43_spill] sm:$0xff]  ;;  %v2235_v7 = vld [vmem:[#allocation37_spill] sm:$0xff] }
 0x1b3   : > { %908 = vmatpush.msrb.mxu2 %v2222_v8  ;;  %783 = vmatmul.f32.vlgmr.msra.gmra.mxu0 %v1204_v14  ;;  %v2236_v8 = vld [vmem:[#allocation38_spill] sm:$0xff] }
 0x1b4   : > { %869 = vmatpush.msrb.mxu0 %v2223_v6  ;;  %889 = vmatpush.msrb.mxu1 %v2224_v19  ;;  %v2237_v6 = vld [vmem:[#allocation39_spill] sm:$0xff]  ;;  %v2238_v19 = vld [vmem:[#allocation48_spill] sm:$0xff] }
 0x1b5   : > { %909 = vmatpush.msrb.mxu2 %v2225_v9  ;;  %927 = vmatpush.msrb.mxu3 %v2226_v3  ;;  %v2239_v9 = vld [vmem:[#allocation33_spill] sm:$0xff]  ;;  %v2240_v3 = vld [vmem:[#allocation34_spill] sm:$0xff] }
 0x1b6   : > { %823 = vmatmul.f32.vlgmr.msra.gmra.mxu2 %v1204_v14  ;;  %870 = vmatpush.msrb.mxu0 %v2227_v10  ;;  %v2241_v10 = vld [vmem:[#allocation35_spill] sm:$0xff] }
 0x1b7   : > { %890 = vmatpush.msrb.mxu1 %v2228_v18  ;;  %910 = vmatpush.msrb.mxu2 %v2229_v2  ;;  %v2243_v18 = vld [vmem:[#allocation40_spill] sm:$0xff] }
 0x1b8   : > { %928 = vmatpush.msrb.mxu3 %v2230_v12  ;;  %871 = vmatpush.msrb.mxu0 %v2231_v11  ;;  %v2244_v2 = vld [vmem:[#allocation36_spill] sm:$0xff]  ;;  %v763_v11 = vld [vmem:[%s762_s8] sm:$0xff] }
 0x1b9   : > { %891 = vmatpush.msrb.mxu1 %v2232_v4  ;;  %911 = vmatpush.msrb.mxu2 %v2233_v13  ;;  %v764_v12 = vld [vmem:[%s762_s8 + $0x8] sm:$0xff] }
 0x1ba   : > { %929 = vmatpush.msrb.mxu3 %v2234_v5  ;;  %872 = vmatpush.msrb.mxu0 %v2235_v7 }
 0x1bb   : > { %843 = vmatmul.f32.vlgmr.msra.gmra.mxu3 %v1204_v14  ;;  %892 = vmatpush.msrb.mxu1 %v2236_v8  ;;  %v2242_v14 = vld [vmem:[#allocation44_spill] sm:$0xff] }
 0x1bc   : > { %912 = vmatpush.msrb.mxu2 %v2237_v6  ;;  %930 = vmatpush.msrb.mxu3 %v2238_v19  ;;  %v765_v19 = vld [vmem:[%s762_s8 + $0x10] sm:$0xff] }
 0x1bd   : > { %873 = vmatpush.msrb.mxu0 %v2239_v9  ;;  %893 = vmatpush.msrb.mxu1 %v2240_v3 }
 0x1be   : > { %913 = vmatpush.msrb.mxu2 %v2241_v10  ;;  %874 = vmatmul.f32.vlgmr.msrb.gmra.mxu0 %v1196_v1  ;;  %v855_v10 = vld [vmem:[%s2037_s11 + $0x8] sm:$0xff] }
 0x1bf   : > { %894 = vmatmul.f32.vlgmr.msrb.gmra.mxu1 %v1196_v1  ;;  %914 = vmatmul.f32.vlgmr.msrb.gmra.mxu2 %v1196_v1 }
 0x1c0   : > { %931 = vmatpush.msrb.mxu3 %v2242_v14 }
 0x1c2   : > { %932 = vmatpush.msrb.mxu3 %v2243_v18 }
 0x1c4   : > { %933 = vmatpush.msrb.mxu3 %v2244_v2 }
 0x1c5   : > { %934 = vmatmul.f32.vlgmr.msrb.gmra.mxu3 %v1196_v1  ;;  %v854_v1 = vld [vmem:[%s2037_s11] sm:$0xff] }
 0x22e   : > { %v804_v4 = vpop.f32.mrf.mxu1 }
 0x22f   : > { %v848_v13 = vadd.f32 %v804_v4, %v764_v12  ;;  %v766_v4 = vld [vmem:[%s762_s8 + $0x18] sm:$0xff] }
 0x230   : > { %v784_v5 = vpop.f32.mrf.mxu0 }
 0x231   : > { %v847_v7 = vadd.f32 %v784_v5, %v763_v11  ;;  %v946_v8 = vmul.f32 0.5, %v848_v13 }
 0x233   : > { %v942_v6 = vmul.f32 0.5, %v847_v7  ;;  %1074 = vtanh.f32 %v946_v8 }
 0x235   : > { %1076 = vtanh.f32 %v942_v6 }
 0x239   : > { %v824_v9 = vpop.f32.mrf.mxu2  ;;  %v1075_v14 = vpop.eup %1074 }
 0x23a   : > { %v849_v3 = vadd.f32 %v824_v9, %v765_v19  ;;  %v948_v2 = vmul.f32 0.5, %v1075_v14 }
 0x23b   : > { %v875_v18 = vpop.f32.mrf.mxu0  ;;  %v1077_v13 = vpop.eup %1076 }
 0x23c   : > { %1078 = vtanh.f32 %v849_v3  ;;  %v938_v12 = vadd.f32 %v875_v18, %v854_v1  ;;  %v895_v11 = vpop.f32.mrf.mxu1  ;;  %v944_v7 = vmul.f32 0.5, %v1077_v13  ;;  %v949_v8 = vadd.f32 0.5, %v948_v2  ;;  %v856_v3 = vld [vmem:[%s2037_s11 + $0x10] sm:$0xff] }
 0x23d   : > { %v939_v5 = vadd.f32 %v895_v11, %v855_v10 }
 0x23e   : > { %v960_v6 = vmul.f32 0.5, %v938_v12  ;;  %v844_v19 = vpop.f32.mrf.mxu3  ;;  %v945_v17 = vadd.f32 0.5, %v944_v7  ;;  %v955_v20 = vmul.f32 %v1200_v15, %v949_v8  ;;  %v857_v12 = vld [vmem:[%s2037_s11 + $0x18] sm:$0xff] }
 0x23f   : > { %v964_v9 = vmul.f32 0.5, %v939_v5  ;;  %v850_v16 = vadd.f32 %v844_v19, %v766_v4 }
 0x240   : > { %1080 = vtanh.f32 %v960_v6 }
 0x241   : > { %1082 = vtanh.f32 %v964_v9  ;;  %v951_v14 = vmul.f32 0.5, %v850_v16 }
 0x242   : > { %v1079_v21 = vpop.eup %1078  ;;  %v915_v18 = vpop.f32.mrf.mxu2 }
 0x243   : > { %v956_v1 = vmul.f32 %v1079_v21, %v945_v17  ;;  %1084 = vtanh.f32 %v951_v14  ;;  %v940_v10 = vadd.f32 %v915_v18, %v856_v3 }
 0x245   : > { %v957_v15 = vadd.f32 %v956_v1, %v955_v20   ;;  %1086 = vtanh.f32 %v940_v10 }
 0x246   : > { %v1081_v2 = vpop.eup %1080 }
 0x247   : > { %1088 = vtanh.f32 %v957_v15  ;;  %v1083_v11 = vpop.eup %1082  ;;  %v962_v4 = vmul.f32 0.5, %v1081_v2 }
 0x248   : > { %v966_v13 = vmul.f32 0.5, %v1083_v11  ;;  %v935_v5 = vpop.f32.mrf.mxu3 }
 0x249   : > { %v1085_v7 = vpop.eup %1084  ;;  %v963_v8 = vadd.f32 0.5, %v962_v4  ;;  %v941_v6 = vadd.f32 %v935_v5, %v857_v12 }
 0x24a   : > { %v967_v19 = vadd.f32 0.5, %v966_v13  ;;  %v953_v16 = vmul.f32 0.5, %v1085_v7 }
 0x24b   : > { %v1087_v17 = vpop.eup %1086  ;;  %v969_v21 = vmul.f32 0.5, %v941_v6 }
 0x24c   : > { %v973_v20 = vmul.f32 %v1192_v0, %v967_v19  ;;  %v954_v3 = vadd.f32 0.5, %v953_v16  ;;  %v974_v14 = vmul.f32 %v1087_v17, %v963_v8 }
 0x24d   : > { %v1089_v9 = vpop.eup %1088  ;;  %1090 = vtanh.f32 %v969_v21 }
 0x24e   : > { %v959_v18 = vmul.f32 %v1089_v9, %v954_v3   ;;  %v975_v0 = vadd.f32 %v974_v14, %v973_v20  }
 0x250   : > { %981 = vst [vmem:[%s980_s15] sm:$0xff] %v959_v18  ;;  %1092 = vtanh.f32 %v975_v0  ;;  %v2245_v14 = vmov %v959_v18 }
 0x253   : > { %v1091_v1 = vpop.eup %1090 }
 0x254   : > { %v971_v10 = vmul.f32 0.5, %v1091_v1 }
 0x256   : > { %v1093_v2 = vpop.eup %1092  ;;  %v972_v12 = vadd.f32 0.5, %v971_v10  ;;  %753 = sbr.rel (!%p751_p0) target bundleno = 382 (0x17e), region = 71 }
 0x258   : > { %v977_v1 = vmul.f32 %v1093_v2, %v972_v12  }
 0x25a   : > { %985 = vst [vmem:[%s984_s1 + $0x8] sm:$0xff] %v977_v1 }
 0x25b   :  { %990 = vsyncpa [#allocation5], 1 }
 0x25c   :  { %991 = vsyncpa [#allocation7], 1 }

</bundles_post_ra>
